<compile_context>
chip_gen: v7x
topology: tpu7x:2x2x1
jax: 0.10.0
libtpu: 0.0.40
codegen_flags: <defaults>
</compile_context>

<pallas_src>
import functools

import jax
import jax.numpy as jnp
from jax.experimental import pallas as pl
from jax.experimental.pallas import tpu as pltpu


# ---------------------------------------------------------------------------
# Fused kernel: all N encoder layers, full batch per grid step.
# ---------------------------------------------------------------------------
def _layer_norm(x, gamma, beta, eps=1e-5):
    mean = jnp.mean(x, axis=-1, keepdims=True)
    var = jnp.mean((x - mean) ** 2, axis=-1, keepdims=True)
    return (x - mean) * jax.lax.rsqrt(var + eps) * gamma + beta


def _fused_encoder_kernel(neg_ref, x_ref, xb_ref,
                          qkvw_ref, qkvb_ref, wo_ref, w1_ref, w2_ref, vec_ref,
                          out_ref, o_scratch, *, num_heads, d_k):
    B, S, D = x_ref.shape
    H = num_heads
    d_ff = w1_ref.shape[-1]

    x2 = x_ref[...].reshape(B * S, D)            # f32 path (residual / LayerNorm)
    xb = xb_ref[...].reshape(B * S, D)           # bf16 MXU operand (cast hoisted to wrapper)

    # Packed per-layer vectors: rows = [bo, ln1_g, ln1_b, b1, b2, ln2_g, ln2_b, pad]
    vec = vec_ref[0]                             # (8, DV) f32
    bo, ln1_g, ln1_b = vec[0:1, :D], vec[1:2, :D], vec[2:3, :D]
    b1 = vec[3:4, :d_ff]
    b2, ln2_g, ln2_b = vec[4:5, :D], vec[5:6, :D], vec[6:7, :D]

    # --- fused QKV projection: one full-width matmul (1/sqrt(d_k) folded into Wq/bq) ---
    qkv = jnp.dot(xb, qkvw_ref[0], preferred_element_type=jnp.float32) + qkvb_ref[0]

    # Key-padding additive bias, broadcast hoisted out of the head loop.
    neg_b = jnp.broadcast_to(neg_ref[...], (B, S, S))        # (B, S_q, S_k) f32

    # --- per-head attention; heads carved from the fused qkv result by static lane offsets.
    # H is tiny here (static unroll); for larger H switch to lax.fori_loop(unroll=True).
    for h in range(H):
        lo = h * d_k
        q = qkv[:, lo:lo + d_k].reshape(B, S, d_k).astype(jnp.bfloat16)
        k = qkv[:, D + lo:D + lo + d_k].reshape(B, S, d_k).astype(jnp.bfloat16)
        v = qkv[:, 2 * D + lo:2 * D + lo + d_k].reshape(B, S, d_k)

        s = jnp.einsum('bqd,bkd->bqk', q, k,
                       preferred_element_type=jnp.float32)   # (B, S, S) f32 (scale in Wq)
        s = s + neg_b
        s = s - jnp.max(s, axis=-1, keepdims=True)
        p = jnp.exp(s)                                        # f32 (v5e-safe)
        p = p * pl.reciprocal(jnp.sum(p, axis=-1, keepdims=True), approx=True)

        o = jnp.einsum('bqk,bkd->bqd', p.astype(jnp.bfloat16), v.astype(jnp.bfloat16),
                       preferred_element_type=jnp.float32)    # (B, S, d_k)
        # Head concat folded into a VMEM scratch write at a static lane offset.
        o_scratch[:, lo:lo + d_k] = o.reshape(B * S, d_k)

    # --- single full-K (D) output projection instead of H accumulating K=d_k dots ---
    attn = jnp.dot(o_scratch[...].astype(jnp.bfloat16), wo_ref[0],
                   preferred_element_type=jnp.float32) + bo   # (B*S, D)

    # dropout == identity in eval mode
    y = _layer_norm(x2 + attn, ln1_g, ln1_b)

    f = jnp.dot(y.astype(jnp.bfloat16), w1_ref[0],
                preferred_element_type=jnp.float32) + b1
    f = jnp.maximum(f, 0.0)
    f = jnp.dot(f.astype(jnp.bfloat16), w2_ref[0],
                preferred_element_type=jnp.float32) + b2
    z = _layer_norm(y + f, ln2_g, ln2_b)

    out_ref[...] = z.reshape(1, B, S, D)         # contiguous per-layer slab


def multilevel_encoder_fused(regions, neg_bias, p, *, num_heads):
    """regions: (B,S,D) f32; neg_bias: (B,1,S) f32; p: stacked per-layer params."""
    B, S, D = regions.shape
    d_k = D // num_heads
    N = p["qkv_w"].shape[0]

    regions_bf16 = regions.astype(jnp.bfloat16)   # cast once, not once per layer

    def const(shape):
        return pl.BlockSpec(shape, lambda l: (0,) * len(shape))

    def per_layer(shape):
        blk = (1,) + tuple(shape[1:])
        return pl.BlockSpec(blk, lambda l: (l,) + (0,) * (len(shape) - 1))

    in_specs = [
        const((B, 1, S)),                         # additive key-padding bias
        const((B, S, D)),                         # regions f32 (resident across layers)
        const((B, S, D)),                         # regions bf16 (resident across layers)
        per_layer(p["qkv_w"].shape),
        per_layer(p["qkv_b"].shape),
        per_layer(p["wo"].shape),
        per_layer(p["w1"].shape),
        per_layer(p["w2"].shape),
        per_layer(p["vec"].shape),
    ]

    out = pl.pallas_call(
        functools.partial(_fused_encoder_kernel, num_heads=num_heads, d_k=d_k),
        out_shape=jax.ShapeDtypeStruct((N, B, S, D), jnp.float32),
        grid=(N,),
        in_specs=in_specs,
        out_specs=pl.BlockSpec((1, B, S, D), lambda l: (l, 0, 0, 0)),
        scratch_shapes=[pltpu.VMEM((B * S, D), jnp.float32)],   # per-head output staging
        compiler_params=pltpu.CompilerParams(dimension_semantics=("parallel",)),
    )(neg_bias, regions, regions_bf16,
      p["qkv_w"], p["qkv_b"], p["wo"], p["w1"], p["w2"], p["vec"])

    # layer-major (N,B,S,D) -> caller layout (B,N,S,D); free wrapper-side transpose
    return jnp.transpose(out, (1, 0, 2, 3))


# ---------------------------------------------------------------------------
# MultiLevelEncoder wrapper
# ---------------------------------------------------------------------------
def _init_stacked_params(key, N, D, H, d_ff):
    d_k = D // H
    scale = 1.0 / float(d_k) ** 0.5
    kq, kk, kv, ko, k1, k2 = jax.random.split(key, 6)
    w = lambda k, s: 0.02 * jax.random.normal(k, s, jnp.float32)

    wq = w(kq, (N, D, D)) * scale          # softmax 1/sqrt(d_k) folded into Wq
    wk = w(kk, (N, D, D))
    wv = w(kv, (N, D, D))
    wo = w(ko, (N, D, D))
    w1 = w(k1, (N, D, d_ff))
    w2 = w(k2, (N, d_ff, D))

    bq = jnp.zeros((N, D), jnp.float32) * scale
    bk = jnp.zeros((N, D), jnp.float32)
    bv = jnp.zeros((N, D), jnp.float32)

    # Fused QKV weight/bias: columns [Q | K | V], heads contiguous (head h at h*d_k).
    qkv_w = jnp.concatenate([wq, wk, wv], axis=-1).astype(jnp.bfloat16)   # (N, D, 3D)
    qkv_b = jnp.concatenate([bq, bk, bv], axis=-1)[:, None, :]            # (N, 1, 3D) f32

    # Pack the 7 small per-layer f32 vectors into one (N, 8, DV) array.
    DV = max(D, d_ff)
    pad = lambda v: jnp.pad(v, ((0, 0), (0, DV - v.shape[-1])))
    bo = jnp.zeros((N, D), jnp.float32)
    ln1_g, ln1_b = jnp.ones((N, D), jnp.float32), jnp.zeros((N, D), jnp.float32)
    b1 = jnp.zeros((N, d_ff), jnp.float32)
    b2 = jnp.zeros((N, D), jnp.float32)
    ln2_g, ln2_b = jnp.ones((N, D), jnp.float32), jnp.zeros((N, D), jnp.float32)
    vec = jnp.stack([pad(bo), pad(ln1_g), pad(ln1_b), pad(b1),
                     pad(b2), pad(ln2_g), pad(ln2_b),
                     jnp.zeros((N, DV), jnp.float32)], axis=1)            # (N, 8, DV)

    # NOTE: weights here are (in, out); a transpose is needed if loading torch nn.Linear
    # weights (which are stored (out, in)).
    return dict(
        qkv_w=qkv_w, qkv_b=qkv_b,
        wo=wo.astype(jnp.bfloat16),
        w1=w1.astype(jnp.bfloat16), w2=w2.astype(jnp.bfloat16),
        vec=vec,
    )


class MultiLevelEncoderPallas:
    def __init__(self, N, padding_idx, d_model=32, h=4, d_ff=64, key=None):
        self.d_model = d_model
        self.h = h
        self.padding_idx = padding_idx
        self.params = _init_stacked_params(key, N, d_model, h, d_ff)

    def __call__(self, image, image_id, enti2attr, sub2obj2rela, sg_mask,
                 regions, boxes):
        # TODO(synk): image / image_id / enti2attr / sub2obj2rela / sg_mask / boxes feed
        # only the undefined ParallelEncoderLayer scene-graph path and are ignored.
        row_sum = jnp.sum(regions, axis=-1)                               # (B, S)
        is_pad = row_sum == self.padding_idx
        attention_mask = is_pad[:, None, None, :]                         # (B,1,1,S) bool
        neg_bias = jnp.where(is_pad, jnp.float32(-1e9),
                             jnp.float32(0.0))[:, None, :]                # (B,1,S) f32

        outs = multilevel_encoder_fused(regions, neg_bias, self.params,
                                        num_heads=self.h)                 # (B, N, S, D)
        return outs, attention_mask


if __name__ == "__main__":
    B, S, D, H, DFF, N = 2, 8, 32, 4, 64, 2
    padding_idx = 0

    key = jax.random.PRNGKey(0)
    k_reg, k_box, k_par = jax.random.split(key, 3)

    regions = jax.random.normal(k_reg, (B, S, D), jnp.float32)
    regions = regions.at[0, -2:].set(0.0)        # padded region features (sum == padding_idx)
    boxes = jax.random.normal(k_box, (B, S, 4), jnp.float32)

    enc = MultiLevelEncoderPallas(N, padding_idx, d_model=D, h=H, d_ff=DFF, key=k_par)
    outs, attention_mask = enc(None, None, None, None, None, regions, boxes)

    outs = jax.block_until_ready(outs)
    attention_mask = jax.block_until_ready(attention_mask)

    assert outs.shape == (B, N, S, D) and outs.dtype == jnp.float32
    assert attention_mask.shape == (B, 1, 1, S) and attention_mask.dtype == jnp.bool_
    assert bool(attention_mask[0, 0, 0, -1]) and not bool(attention_mask[1, 0, 0, 0])
    assert bool(jnp.all(jnp.isfinite(outs)))
    print("KERNEL_OK")
</pallas_src>

<mosaic_0001>
module attributes {stable_mosaic.version = 11 : i64} {
  func.func @_fused_encoder_kernel(%arg0: i32, %arg1: memref<2x1x8xf32, #tpu.memory_space<vmem>>, %arg2: memref<2x8x32xf32, #tpu.memory_space<vmem>>, %arg3: memref<2x8x32xbf16, #tpu.memory_space<vmem>>, %arg4: memref<1x32x96xbf16, #tpu.memory_space<vmem>>, %arg5: memref<1x1x96xf32, #tpu.memory_space<vmem>>, %arg6: memref<1x32x32xbf16, #tpu.memory_space<vmem>>, %arg7: memref<1x32x64xbf16, #tpu.memory_space<vmem>>, %arg8: memref<1x64x32xbf16, #tpu.memory_space<vmem>>, %arg9: memref<1x8x64xf32, #tpu.memory_space<vmem>>, %arg10: memref<1x2x8x32xf32, #tpu.memory_space<vmem>>, %arg11: memref<16x32xf32, #tpu.memory_space<vmem>>) attributes {dimension_semantics = [#tpu.dimension_semantics<parallel>], iteration_bounds = array<i64: 2>, scalar_prefetch = 0 : i64, scratch_operands = 1 : i64, tpu.core_type = #tpu.core_type<tc>, window_params = [{pipeline_mode = #tpu.pipeline_mode<synchronous>, transform_indices = @transform_0, window_bounds = array<i64: 2, 1, 8>}, {pipeline_mode = #tpu.pipeline_mode<synchronous>, transform_indices = @transform_1, window_bounds = array<i64: 2, 8, 32>}, {pipeline_mode = #tpu.pipeline_mode<synchronous>, transform_indices = @transform_2, window_bounds = array<i64: 2, 8, 32>}, {transform_indices = @transform_3, window_bounds = array<i64: 1, 32, 96>}, {transform_indices = @transform_4, window_bounds = array<i64: 1, 1, 96>}, {transform_indices = @transform_5, window_bounds = array<i64: 1, 32, 32>}, {transform_indices = @transform_6, window_bounds = array<i64: 1, 32, 64>}, {transform_indices = @transform_7, window_bounds = array<i64: 1, 64, 32>}, {transform_indices = @transform_8, window_bounds = array<i64: 1, 8, 64>}, {transform_indices = @transform_9, window_bounds = array<i64: 1, 2, 8, 32>}]} {
    %c0 = arith.constant 0 : index
    %c0_0 = arith.constant 0 : index
    %c0_1 = arith.constant 0 : index
    %0 = vector.load %arg2[%c0, %c0_0, %c0_1] : memref<2x8x32xf32, #tpu.memory_space<vmem>>, vector<2x8x32xf32>
    %1 = vector.shape_cast %0 : vector<2x8x32xf32> to vector<16x32xf32>
    %c0_2 = arith.constant 0 : index
    %c0_3 = arith.constant 0 : index
    %c0_4 = arith.constant 0 : index
    %2 = vector.load %arg3[%c0_2, %c0_3, %c0_4] : memref<2x8x32xbf16, #tpu.memory_space<vmem>>, vector<2x8x32xbf16>
    %3 = vector.shape_cast %2 : vector<2x8x32xbf16> to vector<16x32xbf16>
    %c0_5 = arith.constant 0 : index
    %c0_6 = arith.constant 0 : index
    %c0_7 = arith.constant 0 : index
    %4 = vector.load %arg9[%c0_5, %c0_6, %c0_7] : memref<1x8x64xf32, #tpu.memory_space<vmem>>, vector<1x8x64xf32>
    %5 = vector.shape_cast %4 : vector<1x8x64xf32> to vector<8x64xf32>
    %6 = vector.extract_strided_slice %5 {offsets = [0, 0], sizes = [1, 32], strides = [1, 1]} : vector<8x64xf32> to vector<1x32xf32>
    %7 = vector.extract_strided_slice %5 {offsets = [1, 0], sizes = [1, 32], strides = [1, 1]} : vector<8x64xf32> to vector<1x32xf32>
    %8 = vector.extract_strided_slice %5 {offsets = [2, 0], sizes = [1, 32], strides = [1, 1]} : vector<8x64xf32> to vector<1x32xf32>
    %9 = vector.extract_strided_slice %5 {offsets = [3, 0], sizes = [1, 64], strides = [1, 1]} : vector<8x64xf32> to vector<1x64xf32>
    %10 = vector.extract_strided_slice %5 {offsets = [4, 0], sizes = [1, 32], strides = [1, 1]} : vector<8x64xf32> to vector<1x32xf32>
    %11 = vector.extract_strided_slice %5 {offsets = [5, 0], sizes = [1, 32], strides = [1, 1]} : vector<8x64xf32> to vector<1x32xf32>
    %12 = vector.extract_strided_slice %5 {offsets = [6, 0], sizes = [1, 32], strides = [1, 1]} : vector<8x64xf32> to vector<1x32xf32>
    %c0_8 = arith.constant 0 : index
    %c0_9 = arith.constant 0 : index
    %c0_10 = arith.constant 0 : index
    %13 = vector.load %arg4[%c0_8, %c0_9, %c0_10] : memref<1x32x96xbf16, #tpu.memory_space<vmem>>, vector<1x32x96xbf16>
    %14 = vector.shape_cast %13 : vector<1x32x96xbf16> to vector<32x96xbf16>
    %cst = arith.constant dense<0.000000e+00> : vector<16x96xf32>
    %15 = tpu.matmul %3, %14, %cst {dimension_numbers = #tpu.dot_dimension_numbers<[1], [0], [0], [1], [0, 0, 1, 1], [], []>} : vector<16x32xbf16>, vector<32x96xbf16>, vector<16x96xf32> -> vector<16x96xf32>
    %c0_11 = arith.constant 0 : index
    %c0_12 = arith.constant 0 : index
    %c0_13 = arith.constant 0 : index
    %16 = vector.load %arg5[%c0_11, %c0_12, %c0_13] : memref<1x1x96xf32, #tpu.memory_space<vmem>>, vector<1x1x96xf32>
    %17 = vector.shape_cast %16 : vector<1x1x96xf32> to vector<1x96xf32>
    %18 = vector.broadcast %17 : vector<1x96xf32> to vector<16x96xf32>
    %19 = arith.addf %15, %18 : vector<16x96xf32>
    %c0_14 = arith.constant 0 : index
    %c0_15 = arith.constant 0 : index
    %c0_16 = arith.constant 0 : index
    %20 = vector.load %arg1[%c0_14, %c0_15, %c0_16] : memref<2x1x8xf32, #tpu.memory_space<vmem>>, vector<2x1x8xf32>
    %21 = vector.shape_cast %20 : vector<2x1x8xf32> to vector<2x1x8xf32>
    %22 = vector.broadcast %21 : vector<2x1x8xf32> to vector<2x8x8xf32>
    %23 = vector.extract_strided_slice %19 {offsets = [0, 0], sizes = [16, 8], strides = [1, 1]} : vector<16x96xf32> to vector<16x8xf32>
    %24 = vector.shape_cast %23 : vector<16x8xf32> to vector<2x8x8xf32>
    %25 = arith.truncf %24 : vector<2x8x8xf32> to vector<2x8x8xbf16>
    %26 = vector.extract_strided_slice %19 {offsets = [0, 32], sizes = [16, 8], strides = [1, 1]} : vector<16x96xf32> to vector<16x8xf32>
    %27 = vector.shape_cast %26 : vector<16x8xf32> to vector<2x8x8xf32>
    %28 = arith.truncf %27 : vector<2x8x8xf32> to vector<2x8x8xbf16>
    %29 = vector.extract_strided_slice %19 {offsets = [0, 64], sizes = [16, 8], strides = [1, 1]} : vector<16x96xf32> to vector<16x8xf32>
    %30 = vector.shape_cast %29 : vector<16x8xf32> to vector<2x8x8xf32>
    "tpu.trace_start"() <{level = 10 : i32, message = "bqd,bkd->bqk"}> : () -> ()
    %cst_17 = arith.constant dense<0.000000e+00> : vector<2x8x8xf32>
    %31 = tpu.matmul %25, %28, %cst_17 {dimension_numbers = #tpu.dot_dimension_numbers<[2], [2], [1], [1], [0, 0, 0, 1, 1, 1], [0], [0]>} : vector<2x8x8xbf16>, vector<2x8x8xbf16>, vector<2x8x8xf32> -> vector<2x8x8xf32>
    "tpu.trace_stop"() : () -> ()
    %32 = arith.addf %31, %22 : vector<2x8x8xf32>
    %cst_18 = arith.constant dense<0xFF800000> : vector<2x8xf32>
    %33 = vector.multi_reduction <maximumf>, %32, %cst_18 [2] : vector<2x8x8xf32> to vector<2x8xf32>
    %34 = vector.shape_cast %33 : vector<2x8xf32> to vector<2x8x1xf32>
    %35 = vector.broadcast %34 : vector<2x8x1xf32> to vector<2x8x8xf32>
    %36 = arith.subf %32, %35 : vector<2x8x8xf32>
    %37 = math.exp %36 : vector<2x8x8xf32>
    %cst_19 = arith.constant dense<0.000000e+00> : vector<2x8xf32>
    %38 = vector.multi_reduction <add>, %37, %cst_19 [2] : vector<2x8x8xf32> to vector<2x8xf32>
    %39 = vector.shape_cast %38 : vector<2x8xf32> to vector<2x8x1xf32>
    %40 = tpu.reciprocal %39 {approx = true} : vector<2x8x1xf32> -> vector<2x8x1xf32>
    %41 = vector.broadcast %40 : vector<2x8x1xf32> to vector<2x8x8xf32>
    %42 = arith.mulf %37, %41 : vector<2x8x8xf32>
    %43 = arith.truncf %42 : vector<2x8x8xf32> to vector<2x8x8xbf16>
    %44 = arith.truncf %30 : vector<2x8x8xf32> to vector<2x8x8xbf16>
    "tpu.trace_start"() <{level = 10 : i32, message = "bqk,bkd->bqd"}> : () -> ()
    %cst_20 = arith.constant dense<0.000000e+00> : vector<2x8x8xf32>
    %45 = tpu.matmul %43, %44, %cst_20 {dimension_numbers = #tpu.dot_dimension_numbers<[2], [1], [1], [2], [0, 0, 0, 1, 1, 2], [0], [0]>} : vector<2x8x8xbf16>, vector<2x8x8xbf16>, vector<2x8x8xf32> -> vector<2x8x8xf32>
    "tpu.trace_stop"() : () -> ()
    %46 = vector.shape_cast %45 : vector<2x8x8xf32> to vector<16x8xf32>
    %c0_21 = arith.constant 0 : index
    %c0_22 = arith.constant 0 : index
    %47 = vector.load %arg11[%c0_21, %c0_22] : memref<16x32xf32, #tpu.memory_space<vmem>>, vector<16x8xf32>
    tpu.vector_store %arg11[%c0_21, %c0_22], %46 {strides = array<i32>} : memref<16x32xf32, #tpu.memory_space<vmem>>, vector<16x8xf32>,
    %48 = vector.extract_strided_slice %19 {offsets = [0, 8], sizes = [16, 8], strides = [1, 1]} : vector<16x96xf32> to vector<16x8xf32>
    %49 = vector.shape_cast %48 : vector<16x8xf32> to vector<2x8x8xf32>
    %50 = arith.truncf %49 : vector<2x8x8xf32> to vector<2x8x8xbf16>
    %51 = vector.extract_strided_slice %19 {offsets = [0, 40], sizes = [16, 8], strides = [1, 1]} : vector<16x96xf32> to vector<16x8xf32>
    %52 = vector.shape_cast %51 : vector<16x8xf32> to vector<2x8x8xf32>
    %53 = arith.truncf %52 : vector<2x8x8xf32> to vector<2x8x8xbf16>
    %54 = vector.extract_strided_slice %19 {offsets = [0, 72], sizes = [16, 8], strides = [1, 1]} : vector<16x96xf32> to vector<16x8xf32>
    %55 = vector.shape_cast %54 : vector<16x8xf32> to vector<2x8x8xf32>
    "tpu.trace_start"() <{level = 10 : i32, message = "bqd,bkd->bqk"}> : () -> ()
    %cst_23 = arith.constant dense<0.000000e+00> : vector<2x8x8xf32>
    %56 = tpu.matmul %50, %53, %cst_23 {dimension_numbers = #tpu.dot_dimension_numbers<[2], [2], [1], [1], [0, 0, 0, 1, 1, 1], [0], [0]>} : vector<2x8x8xbf16>, vector<2x8x8xbf16>, vector<2x8x8xf32> -> vector<2x8x8xf32>
    "tpu.trace_stop"() : () -> ()
    %57 = arith.addf %56, %22 : vector<2x8x8xf32>
    %cst_24 = arith.constant dense<0xFF800000> : vector<2x8xf32>
    %58 = vector.multi_reduction <maximumf>, %57, %cst_24 [2] : vector<2x8x8xf32> to vector<2x8xf32>
    %59 = vector.shape_cast %58 : vector<2x8xf32> to vector<2x8x1xf32>
    %60 = vector.broadcast %59 : vector<2x8x1xf32> to vector<2x8x8xf32>
    %61 = arith.subf %57, %60 : vector<2x8x8xf32>
    %62 = math.exp %61 : vector<2x8x8xf32>
    %cst_25 = arith.constant dense<0.000000e+00> : vector<2x8xf32>
    %63 = vector.multi_reduction <add>, %62, %cst_25 [2] : vector<2x8x8xf32> to vector<2x8xf32>
    %64 = vector.shape_cast %63 : vector<2x8xf32> to vector<2x8x1xf32>
    %65 = tpu.reciprocal %64 {approx = true} : vector<2x8x1xf32> -> vector<2x8x1xf32>
    %66 = vector.broadcast %65 : vector<2x8x1xf32> to vector<2x8x8xf32>
    %67 = arith.mulf %62, %66 : vector<2x8x8xf32>
    %68 = arith.truncf %67 : vector<2x8x8xf32> to vector<2x8x8xbf16>
    %69 = arith.truncf %55 : vector<2x8x8xf32> to vector<2x8x8xbf16>
    "tpu.trace_start"() <{level = 10 : i32, message = "bqk,bkd->bqd"}> : () -> ()
    %cst_26 = arith.constant dense<0.000000e+00> : vector<2x8x8xf32>
    %70 = tpu.matmul %68, %69, %cst_26 {dimension_numbers = #tpu.dot_dimension_numbers<[2], [1], [1], [2], [0, 0, 0, 1, 1, 2], [0], [0]>} : vector<2x8x8xbf16>, vector<2x8x8xbf16>, vector<2x8x8xf32> -> vector<2x8x8xf32>
    "tpu.trace_stop"() : () -> ()
    %71 = vector.shape_cast %70 : vector<2x8x8xf32> to vector<16x8xf32>
    %c0_27 = arith.constant 0 : index
    %c8 = arith.constant 8 : index
    %72 = vector.load %arg11[%c0_27, %c8] : memref<16x32xf32, #tpu.memory_space<vmem>>, vector<16x8xf32>
    tpu.vector_store %arg11[%c0_27, %c8], %71 {strides = array<i32>} : memref<16x32xf32, #tpu.memory_space<vmem>>, vector<16x8xf32>,
    %73 = vector.extract_strided_slice %19 {offsets = [0, 16], sizes = [16, 8], strides = [1, 1]} : vector<16x96xf32> to vector<16x8xf32>
    %74 = vector.shape_cast %73 : vector<16x8xf32> to vector<2x8x8xf32>
    %75 = arith.truncf %74 : vector<2x8x8xf32> to vector<2x8x8xbf16>
    %76 = vector.extract_strided_slice %19 {offsets = [0, 48], sizes = [16, 8], strides = [1, 1]} : vector<16x96xf32> to vector<16x8xf32>
    %77 = vector.shape_cast %76 : vector<16x8xf32> to vector<2x8x8xf32>
    %78 = arith.truncf %77 : vector<2x8x8xf32> to vector<2x8x8xbf16>
    %79 = vector.extract_strided_slice %19 {offsets = [0, 80], sizes = [16, 8], strides = [1, 1]} : vector<16x96xf32> to vector<16x8xf32>
    %80 = vector.shape_cast %79 : vector<16x8xf32> to vector<2x8x8xf32>
    "tpu.trace_start"() <{level = 10 : i32, message = "bqd,bkd->bqk"}> : () -> ()
    %cst_28 = arith.constant dense<0.000000e+00> : vector<2x8x8xf32>
    %81 = tpu.matmul %75, %78, %cst_28 {dimension_numbers = #tpu.dot_dimension_numbers<[2], [2], [1], [1], [0, 0, 0, 1, 1, 1], [0], [0]>} : vector<2x8x8xbf16>, vector<2x8x8xbf16>, vector<2x8x8xf32> -> vector<2x8x8xf32>
    "tpu.trace_stop"() : () -> ()
    %82 = arith.addf %81, %22 : vector<2x8x8xf32>
    %cst_29 = arith.constant dense<0xFF800000> : vector<2x8xf32>
    %83 = vector.multi_reduction <maximumf>, %82, %cst_29 [2] : vector<2x8x8xf32> to vector<2x8xf32>
    %84 = vector.shape_cast %83 : vector<2x8xf32> to vector<2x8x1xf32>
    %85 = vector.broadcast %84 : vector<2x8x1xf32> to vector<2x8x8xf32>
    %86 = arith.subf %82, %85 : vector<2x8x8xf32>
    %87 = math.exp %86 : vector<2x8x8xf32>
    %cst_30 = arith.constant dense<0.000000e+00> : vector<2x8xf32>
    %88 = vector.multi_reduction <add>, %87, %cst_30 [2] : vector<2x8x8xf32> to vector<2x8xf32>
    %89 = vector.shape_cast %88 : vector<2x8xf32> to vector<2x8x1xf32>
    %90 = tpu.reciprocal %89 {approx = true} : vector<2x8x1xf32> -> vector<2x8x1xf32>
    %91 = vector.broadcast %90 : vector<2x8x1xf32> to vector<2x8x8xf32>
    %92 = arith.mulf %87, %91 : vector<2x8x8xf32>
    %93 = arith.truncf %92 : vector<2x8x8xf32> to vector<2x8x8xbf16>
    %94 = arith.truncf %80 : vector<2x8x8xf32> to vector<2x8x8xbf16>
    "tpu.trace_start"() <{level = 10 : i32, message = "bqk,bkd->bqd"}> : () -> ()
    %cst_31 = arith.constant dense<0.000000e+00> : vector<2x8x8xf32>
    %95 = tpu.matmul %93, %94, %cst_31 {dimension_numbers = #tpu.dot_dimension_numbers<[2], [1], [1], [2], [0, 0, 0, 1, 1, 2], [0], [0]>} : vector<2x8x8xbf16>, vector<2x8x8xbf16>, vector<2x8x8xf32> -> vector<2x8x8xf32>
    "tpu.trace_stop"() : () -> ()
    %96 = vector.shape_cast %95 : vector<2x8x8xf32> to vector<16x8xf32>
    %c0_32 = arith.constant 0 : index
    %c16 = arith.constant 16 : index
    %97 = vector.load %arg11[%c0_32, %c16] : memref<16x32xf32, #tpu.memory_space<vmem>>, vector<16x8xf32>
    tpu.vector_store %arg11[%c0_32, %c16], %96 {strides = array<i32>} : memref<16x32xf32, #tpu.memory_space<vmem>>, vector<16x8xf32>,
    %98 = vector.extract_strided_slice %19 {offsets = [0, 24], sizes = [16, 8], strides = [1, 1]} : vector<16x96xf32> to vector<16x8xf32>
    %99 = vector.shape_cast %98 : vector<16x8xf32> to vector<2x8x8xf32>
    %100 = arith.truncf %99 : vector<2x8x8xf32> to vector<2x8x8xbf16>
    %101 = vector.extract_strided_slice %19 {offsets = [0, 56], sizes = [16, 8], strides = [1, 1]} : vector<16x96xf32> to vector<16x8xf32>
    %102 = vector.shape_cast %101 : vector<16x8xf32> to vector<2x8x8xf32>
    %103 = arith.truncf %102 : vector<2x8x8xf32> to vector<2x8x8xbf16>
    %104 = vector.extract_strided_slice %19 {offsets = [0, 88], sizes = [16, 8], strides = [1, 1]} : vector<16x96xf32> to vector<16x8xf32>
    %105 = vector.shape_cast %104 : vector<16x8xf32> to vector<2x8x8xf32>
    "tpu.trace_start"() <{level = 10 : i32, message = "bqd,bkd->bqk"}> : () -> ()
    %cst_33 = arith.constant dense<0.000000e+00> : vector<2x8x8xf32>
    %106 = tpu.matmul %100, %103, %cst_33 {dimension_numbers = #tpu.dot_dimension_numbers<[2], [2], [1], [1], [0, 0, 0, 1, 1, 1], [0], [0]>} : vector<2x8x8xbf16>, vector<2x8x8xbf16>, vector<2x8x8xf32> -> vector<2x8x8xf32>
    "tpu.trace_stop"() : () -> ()
    %107 = arith.addf %106, %22 : vector<2x8x8xf32>
    %cst_34 = arith.constant dense<0xFF800000> : vector<2x8xf32>
    %108 = vector.multi_reduction <maximumf>, %107, %cst_34 [2] : vector<2x8x8xf32> to vector<2x8xf32>
    %109 = vector.shape_cast %108 : vector<2x8xf32> to vector<2x8x1xf32>
    %110 = vector.broadcast %109 : vector<2x8x1xf32> to vector<2x8x8xf32>
    %111 = arith.subf %107, %110 : vector<2x8x8xf32>
    %112 = math.exp %111 : vector<2x8x8xf32>
    %cst_35 = arith.constant dense<0.000000e+00> : vector<2x8xf32>
    %113 = vector.multi_reduction <add>, %112, %cst_35 [2] : vector<2x8x8xf32> to vector<2x8xf32>
    %114 = vector.shape_cast %113 : vector<2x8xf32> to vector<2x8x1xf32>
    %115 = tpu.reciprocal %114 {approx = true} : vector<2x8x1xf32> -> vector<2x8x1xf32>
    %116 = vector.broadcast %115 : vector<2x8x1xf32> to vector<2x8x8xf32>
    %117 = arith.mulf %112, %116 : vector<2x8x8xf32>
    %118 = arith.truncf %117 : vector<2x8x8xf32> to vector<2x8x8xbf16>
    %119 = arith.truncf %105 : vector<2x8x8xf32> to vector<2x8x8xbf16>
    "tpu.trace_start"() <{level = 10 : i32, message = "bqk,bkd->bqd"}> : () -> ()
    %cst_36 = arith.constant dense<0.000000e+00> : vector<2x8x8xf32>
    %120 = tpu.matmul %118, %119, %cst_36 {dimension_numbers = #tpu.dot_dimension_numbers<[2], [1], [1], [2], [0, 0, 0, 1, 1, 2], [0], [0]>} : vector<2x8x8xbf16>, vector<2x8x8xbf16>, vector<2x8x8xf32> -> vector<2x8x8xf32>
    "tpu.trace_stop"() : () -> ()
    %121 = vector.shape_cast %120 : vector<2x8x8xf32> to vector<16x8xf32>
    %c0_37 = arith.constant 0 : index
    %c24 = arith.constant 24 : index
    %122 = vector.load %arg11[%c0_37, %c24] : memref<16x32xf32, #tpu.memory_space<vmem>>, vector<16x8xf32>
    tpu.vector_store %arg11[%c0_37, %c24], %121 {strides = array<i32>} : memref<16x32xf32, #tpu.memory_space<vmem>>, vector<16x8xf32>,
    %c0_38 = arith.constant 0 : index
    %c0_39 = arith.constant 0 : index
    %123 = vector.load %arg11[%c0_38, %c0_39] : memref<16x32xf32, #tpu.memory_space<vmem>>, vector<16x32xf32>
    %124 = arith.truncf %123 : vector<16x32xf32> to vector<16x32xbf16>
    %c0_40 = arith.constant 0 : index
    %c0_41 = arith.constant 0 : index
    %c0_42 = arith.constant 0 : index
    %125 = vector.load %arg6[%c0_40, %c0_41, %c0_42] : memref<1x32x32xbf16, #tpu.memory_space<vmem>>, vector<1x32x32xbf16>
    %126 = vector.shape_cast %125 : vector<1x32x32xbf16> to vector<32x32xbf16>
    %cst_43 = arith.constant dense<0.000000e+00> : vector<16x32xf32>
    %127 = tpu.matmul %124, %126, %cst_43 {dimension_numbers = #tpu.dot_dimension_numbers<[1], [0], [0], [1], [0, 0, 1, 1], [], []>} : vector<16x32xbf16>, vector<32x32xbf16>, vector<16x32xf32> -> vector<16x32xf32>
    %128 = vector.broadcast %6 : vector<1x32xf32> to vector<16x32xf32>
    %129 = arith.addf %127, %128 : vector<16x32xf32>
    %130 = arith.addf %1, %129 : vector<16x32xf32>
    %cst_44 = arith.constant dense<0.000000e+00> : vector<16xf32>
    %131 = vector.multi_reduction <add>, %130, %cst_44 [1] : vector<16x32xf32> to vector<16xf32>
    %132 = vector.shape_cast %131 : vector<16xf32> to vector<16x1xf32>
    %cst_45 = arith.constant 3.200000e+01 : f32
    %133 = vector.broadcast %cst_45 : f32 to vector<16x1xf32>
    %134 = arith.divf %132, %133 : vector<16x1xf32>
    %135 = vector.broadcast %134 : vector<16x1xf32> to vector<16x32xf32>
    %136 = arith.subf %130, %135 : vector<16x32xf32>
    %137 = arith.mulf %136, %136 : vector<16x32xf32>
    %cst_46 = arith.constant dense<0.000000e+00> : vector<16xf32>
    %138 = vector.multi_reduction <add>, %137, %cst_46 [1] : vector<16x32xf32> to vector<16xf32>
    %139 = vector.shape_cast %138 : vector<16xf32> to vector<16x1xf32>
    %cst_47 = arith.constant 3.200000e+01 : f32
    %140 = vector.broadcast %cst_47 : f32 to vector<16x1xf32>
    %141 = arith.divf %139, %140 : vector<16x1xf32>
    %142 = vector.broadcast %134 : vector<16x1xf32> to vector<16x32xf32>
    %143 = arith.subf %130, %142 : vector<16x32xf32>
    %cst_48 = arith.constant 9.99999974E-6 : f32
    %144 = vector.broadcast %cst_48 : f32 to vector<16x1xf32>
    %145 = arith.addf %141, %144 : vector<16x1xf32>
    %146 = math.rsqrt %145 : vector<16x1xf32>
    %147 = vector.broadcast %146 : vector<16x1xf32> to vector<16x32xf32>
    %148 = arith.mulf %143, %147 : vector<16x32xf32>
    %149 = vector.broadcast %7 : vector<1x32xf32> to vector<16x32xf32>
    %150 = arith.mulf %148, %149 : vector<16x32xf32>
    %151 = vector.broadcast %8 : vector<1x32xf32> to vector<16x32xf32>
    %152 = arith.addf %150, %151 : vector<16x32xf32>
    %153 = arith.truncf %152 : vector<16x32xf32> to vector<16x32xbf16>
    %c0_49 = arith.constant 0 : index
    %c0_50 = arith.constant 0 : index
    %c0_51 = arith.constant 0 : index
    %154 = vector.load %arg7[%c0_49, %c0_50, %c0_51] : memref<1x32x64xbf16, #tpu.memory_space<vmem>>, vector<1x32x64xbf16>
    %155 = vector.shape_cast %154 : vector<1x32x64xbf16> to vector<32x64xbf16>
    %cst_52 = arith.constant dense<0.000000e+00> : vector<16x64xf32>
    %156 = tpu.matmul %153, %155, %cst_52 {dimension_numbers = #tpu.dot_dimension_numbers<[1], [0], [0], [1], [0, 0, 1, 1], [], []>} : vector<16x32xbf16>, vector<32x64xbf16>, vector<16x64xf32> -> vector<16x64xf32>
    %157 = vector.broadcast %9 : vector<1x64xf32> to vector<16x64xf32>
    %158 = arith.addf %156, %157 : vector<16x64xf32>
    %cst_53 = arith.constant 0.000000e+00 : f32
    %159 = vector.broadcast %cst_53 : f32 to vector<16x64xf32>
    %160 = arith.maximumf %158, %159 : vector<16x64xf32>
    %161 = arith.truncf %160 : vector<16x64xf32> to vector<16x64xbf16>
    %c0_54 = arith.constant 0 : index
    %c0_55 = arith.constant 0 : index
    %c0_56 = arith.constant 0 : index
    %162 = vector.load %arg8[%c0_54, %c0_55, %c0_56] : memref<1x64x32xbf16, #tpu.memory_space<vmem>>, vector<1x64x32xbf16>
    %163 = vector.shape_cast %162 : vector<1x64x32xbf16> to vector<64x32xbf16>
    %cst_57 = arith.constant dense<0.000000e+00> : vector<16x32xf32>
    %164 = tpu.matmul %161, %163, %cst_57 {dimension_numbers = #tpu.dot_dimension_numbers<[1], [0], [0], [1], [0, 0, 1, 1], [], []>} : vector<16x64xbf16>, vector<64x32xbf16>, vector<16x32xf32> -> vector<16x32xf32>
    %165 = vector.broadcast %10 : vector<1x32xf32> to vector<16x32xf32>
    %166 = arith.addf %164, %165 : vector<16x32xf32>
    %167 = arith.addf %152, %166 : vector<16x32xf32>
    %cst_58 = arith.constant dense<0.000000e+00> : vector<16xf32>
    %168 = vector.multi_reduction <add>, %167, %cst_58 [1] : vector<16x32xf32> to vector<16xf32>
    %169 = vector.shape_cast %168 : vector<16xf32> to vector<16x1xf32>
    %cst_59 = arith.constant 3.200000e+01 : f32
    %170 = vector.broadcast %cst_59 : f32 to vector<16x1xf32>
    %171 = arith.divf %169, %170 : vector<16x1xf32>
    %172 = vector.broadcast %171 : vector<16x1xf32> to vector<16x32xf32>
    %173 = arith.subf %167, %172 : vector<16x32xf32>
    %174 = arith.mulf %173, %173 : vector<16x32xf32>
    %cst_60 = arith.constant dense<0.000000e+00> : vector<16xf32>
    %175 = vector.multi_reduction <add>, %174, %cst_60 [1] : vector<16x32xf32> to vector<16xf32>
    %176 = vector.shape_cast %175 : vector<16xf32> to vector<16x1xf32>
    %cst_61 = arith.constant 3.200000e+01 : f32
    %177 = vector.broadcast %cst_61 : f32 to vector<16x1xf32>
    %178 = arith.divf %176, %177 : vector<16x1xf32>
    %179 = vector.broadcast %171 : vector<16x1xf32> to vector<16x32xf32>
    %180 = arith.subf %167, %179 : vector<16x32xf32>
    %cst_62 = arith.constant 9.99999974E-6 : f32
    %181 = vector.broadcast %cst_62 : f32 to vector<16x1xf32>
    %182 = arith.addf %178, %181 : vector<16x1xf32>
    %183 = math.rsqrt %182 : vector<16x1xf32>
    %184 = vector.broadcast %183 : vector<16x1xf32> to vector<16x32xf32>
    %185 = arith.mulf %180, %184 : vector<16x32xf32>
    %186 = vector.broadcast %11 : vector<1x32xf32> to vector<16x32xf32>
    %187 = arith.mulf %185, %186 : vector<16x32xf32>
    %188 = vector.broadcast %12 : vector<1x32xf32> to vector<16x32xf32>
    %189 = arith.addf %187, %188 : vector<16x32xf32>
    %190 = vector.shape_cast %189 : vector<16x32xf32> to vector<1x2x8x32xf32>
    %c0_63 = arith.constant 0 : index
    %c0_64 = arith.constant 0 : index
    %c0_65 = arith.constant 0 : index
    %c0_66 = arith.constant 0 : index
    %191 = vector.load %arg10[%c0_63, %c0_64, %c0_65, %c0_66] : memref<1x2x8x32xf32, #tpu.memory_space<vmem>>, vector<1x2x8x32xf32>
    tpu.vector_store %arg10[%c0_63, %c0_64, %c0_65, %c0_66], %190 {strides = array<i32>} : memref<1x2x8x32xf32, #tpu.memory_space<vmem>>, vector<1x2x8x32xf32>,
    return
  }
  func.func @transform_0(%arg0: i32) -> (i32, i32, i32) {
    %c0_i32 = arith.constant 0 : i32
    %c0_i32_0 = arith.constant 0 : i32
    %c0_i32_1 = arith.constant 0 : i32
    %c0_i32_2 = arith.constant 0 : i32
    return %c0_i32, %c0_i32_0, %c0_i32_1 : i32, i32, i32
  }
  func.func @transform_1(%arg0: i32) -> (i32, i32, i32) {
    %c0_i32 = arith.constant 0 : i32
    %c0_i32_0 = arith.constant 0 : i32
    %c0_i32_1 = arith.constant 0 : i32
    %c0_i32_2 = arith.constant 0 : i32
    return %c0_i32, %c0_i32_0, %c0_i32_1 : i32, i32, i32
  }
  func.func @transform_2(%arg0: i32) -> (i32, i32, i32) {
    %c0_i32 = arith.constant 0 : i32
    %c0_i32_0 = arith.constant 0 : i32
    %c0_i32_1 = arith.constant 0 : i32
    %c0_i32_2 = arith.constant 0 : i32
    return %c0_i32, %c0_i32_0, %c0_i32_1 : i32, i32, i32
  }
  func.func @transform_3(%arg0: i32) -> (i32, i32, i32) {
    %c0_i32 = arith.constant 0 : i32
    %c0_i32_0 = arith.constant 0 : i32
    %c0_i32_1 = arith.constant 0 : i32
    return %arg0, %c0_i32, %c0_i32_0 : i32, i32, i32
  }
  func.func @transform_4(%arg0: i32) -> (i32, i32, i32) {
    %c0_i32 = arith.constant 0 : i32
    %c0_i32_0 = arith.constant 0 : i32
    %c0_i32_1 = arith.constant 0 : i32
    return %arg0, %c0_i32, %c0_i32_0 : i32, i32, i32
  }
  func.func @transform_5(%arg0: i32) -> (i32, i32, i32) {
    %c0_i32 = arith.constant 0 : i32
    %c0_i32_0 = arith.constant 0 : i32
    %c0_i32_1 = arith.constant 0 : i32
    return %arg0, %c0_i32, %c0_i32_0 : i32, i32, i32
  }
  func.func @transform_6(%arg0: i32) -> (i32, i32, i32) {
    %c0_i32 = arith.constant 0 : i32
    %c0_i32_0 = arith.constant 0 : i32
    %c0_i32_1 = arith.constant 0 : i32
    return %arg0, %c0_i32, %c0_i32_0 : i32, i32, i32
  }
  func.func @transform_7(%arg0: i32) -> (i32, i32, i32) {
    %c0_i32 = arith.constant 0 : i32
    %c0_i32_0 = arith.constant 0 : i32
    %c0_i32_1 = arith.constant 0 : i32
    return %arg0, %c0_i32, %c0_i32_0 : i32, i32, i32
  }
  func.func @transform_8(%arg0: i32) -> (i32, i32, i32) {
    %c0_i32 = arith.constant 0 : i32
    %c0_i32_0 = arith.constant 0 : i32
    %c0_i32_1 = arith.constant 0 : i32
    return %arg0, %c0_i32, %c0_i32_0 : i32, i32, i32
  }
  func.func @transform_9(%arg0: i32) -> (i32, i32, i32, i32) {
    %c0_i32 = arith.constant 0 : i32
    %c0_i32_0 = arith.constant 0 : i32
    %c0_i32_1 = arith.constant 0 : i32
    %c0_i32_2 = arith.constant 0 : i32
    return %arg0, %c0_i32, %c0_i32_0, %c0_i32_1 : i32, i32, i32, i32
  }
}

</mosaic_0001>

<bundles_post_ra>
// kernel: tpu_custom_call.1
= control target key start
LH: loop header
LB: loop body
LE: loop exit
PB: predicated region body
PF: predicated region fallthrough
CT: control target
= control target key end

     0   :  { %s2986_s0 = inlined_call_operand.hbm [shape: f32[2,1,8], index: 0, kind: input, shape index: {}]   ;;  %s2987_s1 = inlined_call_operand.hbm [shape: f32[2,8,32], index: 1, kind: input, shape index: {}]   ;;  %s2988_s2 = inlined_call_operand.hbm [shape: bf16[2,8,32], index: 2, kind: input, shape index: {}]   ;;  %s2989_s3 = inlined_call_operand.vmem [shape: bf16[2,32,96], index: 3, kind: input, shape index: {}]   ;;  %s2990_s4 = inlined_call_operand.vmem [shape: f32[2,1,96], index: 4, kind: input, shape index: {}]   ;;  %s2991_s5 = inlined_call_operand.vmem [shape: bf16[2,32,32], index: 5, kind: input, shape index: {}]   ;;  %s2992_s6 = inlined_call_operand.vmem [shape: bf16[2,32,64], index: 6, kind: input, shape index: {}]   ;;  %s2993_s7 = inlined_call_operand.vmem [shape: bf16[2,64,32], index: 7, kind: input, shape index: {}]   ;;  %s2994_s8 = inlined_call_operand.vmem [shape: f32[2,8,64], index: 8, kind: input, shape index: {}]   ;;  %s2995_s9 = inlined_call_operand.hbm [shape: f32[2,2,8,32], index: 9, kind: output, shape index: {}]  }
   0x1   :  { %3003 = sst [smem:[#allocation17_spill]] %s2987_s1 }
   0x2   :  { %14 = vsyncpa [#allocation4], 0 }
   0x3   :  { %15 = vsyncpa [#allocation7], 0 }
   0x4   :  { %16 = vsyncpa [#allocation5], 0 }
   0x5   :  { %18 = vsyncpa [#allocation5 + $0x1], 0  ;;  %s2558_s30 = smov 0   ;;  %s2560_s10 = smov 0  }
   0x6   :  { %s2562_s11 = smov 0   ;;  %s2564_s12 = smov 0  }
   0x7 LB: > { %3004 = sst [smem:[#allocation13_spill]] %s2475_s11  ;;  %s2579_s13 = sadd.s32 4294967295, %s2479_s12   ;;  %s2479_s12 = sphi %s2564_s12, %s3022_s12   ;;  %s2475_s11 = sphi %s2562_s11, %s3024_s11   ;;  %s2471_s10 = sphi %s2560_s10, %s3026_s10   ;;  %s2467_s30 = sphi %s2558_s30, %s3025_s30  }
   0x8   : > { %s1939_s14 = sadd.s32 4294967294, %s2479_s12   ;;  %s2583_s15 = sadd.s32 1, %s2479_s12  }
   0x9   : > { %3005 = sst [smem:[#allocation14_spill]] %s2583_s15  ;;  %s250_s16 = sadd.s32 1, %s2475_s11 }
   0xa   : > { %s247_s17 = ssub.s32 %s2479_s12, %s2583_s15  ;;  %p260_p0 = scmp.ne.s32.totalorder %s2475_s11, %s2471_s10 }
   0xb   : > { %p248_p1 = scmp.eq.s32.totalorder %s247_s17, 0  ;;  %p261_p2 = scmp.eq.s32.totalorder %s2579_s13, 1 }
   0xc   : > { %p266_p3 = scmp.ne.s32.totalorder %s2471_s10, %s2467_s30  ;;  %p267_p4 = scmp.eq.s32.totalorder %s1939_s14, 1 }
   0xd   : > { %s2594_s18 = scalar_select %p248_p1, %s2475_s11, %s250_s16  }
   0xe   : > { %p2596_p5 = por %p261_p2, %p260_p0  ;;  %p2600_p6 = por %p267_p4, %p266_p3 }
   0xf   : > { %3006 = sst [smem:[#allocation15_spill]] %s2594_s18  ;;  %p1940_p7 = scmp.ge.s32.totalorder %s2479_s12, 1 }
  0x10   : > { %s3007_s19 = scalar_select %p2596_p5, 1, 0 }
  0x11   : > { %s3008_s20 = scalar_select %p2600_p6, 1, 0 }
  0x12   : > { %p274_p8 = scmp.lt.s32.totalorder %s2479_s12, 3  ;;  %p2996_p9 = scmp.eq.s32.totalorder %s2579_s13, 0 }
  0x13   : > { %3009 = sst [smem:[#allocation16_spill]] %s3008_s20  ;;  %s2481_s22 = smov [#allocation6]  }
  0x14   : > { %p2607_p10 = pnand %p1940_p7, %p274_p8  ;;  %s299_s23 = sshll.u32 %s2481_s22, 4  ;;  %s300_s23 = int_to_ptr.vmem [resolvable:$true] %s299_s23 }
  0x15   : > { %s2482_s25 = smov [#allocation3]   ;;  %s3012_s1 = sld [smem:[#allocation17_spill]] }
  0x16   : > { %s3010_s21 = scalar_select %p2607_p10, 1, 0 }
  0x17   : > { %p2195_p11 = pneg %p2607_p10  ;;  %s286_s26 = sshll.u32 %s2482_s25, 4  ;;  %s2619_s26 = int_to_ptr.vmem [resolvable:$true] %s286_s26 }
  0x19   : > { %p2615_p12 = pnand %p2996_p9, %p2195_p11 }
  0x1b   : > { %s2325_s29 = scalar_lea.hbm %s3012_s1, 256  ;;  %p2629_p0 = pneg %p2615_p12 }
  0x1c   : > { %p2326_p13 = scmp.ne.s32.totalorder %s3012_s1, %s2325_s29  ;;  %p2332_p3 = scmp.lt.u32.totalorder %s2325_s29, %s3012_s1 }
  0x1e   : > { %p2328_p1 = pnand %p2629_p0, %p2326_p13 }
  0x20   : > { %p2329_p2 = pneg %p2328_p1 }
  0x22   : > { %p2334_p4 = pnand %p2332_p3, %p2329_p2 }
  0x24   : > { %2337 = shalt.err (!%p2334_p4)
}
  0x25   : > { %s2338_s27 = scalar_lea.vmem %s300_s23, 256  ;;  %p2346_p9 = scmp.lt.s32.totalorder %s300_s23, %s300_s23 }
  0x26   : > { %p2339_p7 = scmp.ne.s32.totalorder %s300_s23, %s2338_s27  ;;  %p2347_p6 = scmp.lt.s32.totalorder %s2338_s27, %s2338_s27 }
  0x28   : > { %p2341_p8 = pnand %p2339_p7, %p2629_p0  ;;  %p2348_p5 = por %p2347_p6, %p2346_p9 }
  0x2a   : > { %p2342_p11 = pneg %p2341_p8 }
  0x2c   : > { %p2349_p10 = pnand %p2348_p5, %p2342_p11 }
  0x2e   : > { %2352 = shalt.err (!%p2349_p10)
}
  0x2f   : > { %s2483_s28 = smov 128   ;;  %s2484_s14 = smov 8  }
  0x30   : > { %2201 = dma.hbm_to_vmem [thread:$0]  (!%p2615_p12), %s3012_s1, 256, %s300_s23, [#allocation7], %s2483_s28, %s2483_s28, %s2484_s14  }
  0x31   : > { %s2353_s18 = scalar_lea.hbm %s2986_s0, 32 }
  0x32   : > { %p2354_p13 = scmp.ne.s32.totalorder %s2986_s0, %s2353_s18  ;;  %p2360_p9 = scmp.lt.u32.totalorder %s2353_s18, %s2986_s0 }
  0x34   : > { %p2356_p5 = pnand %p2354_p13, %p2629_p0 }
  0x36   : > { %p2357_p6 = pneg %p2356_p5 }
  0x38   : > { %p2362_p10 = pnand %p2360_p9, %p2357_p6 }
  0x3a   : > { %2365 = shalt.err (!%p2362_p10)
}
  0x3b   : > { %s2366_s23 = scalar_lea.vmem %s2619_s26, 32  ;;  %p2374_p4 = scmp.lt.s32.totalorder %s2619_s26, %s2619_s26 }
  0x3c   : > { %p2367_p1 = scmp.ne.s32.totalorder %s2619_s26, %s2366_s23  ;;  %p2375_p7 = scmp.lt.s32.totalorder %s2366_s23, %s2366_s23 }
  0x3e   : > { %p2369_p2 = pnand %p2367_p1, %p2629_p0  ;;  %p2376_p8 = por %p2375_p7, %p2374_p4 }
  0x40   : > { %p2370_p3 = pneg %p2369_p2 }
  0x42   : > { %p2377_p11 = pnand %p2376_p8, %p2370_p3 }
  0x44   : > { %2380 = shalt.err (!%p2377_p11)
}
  0x45   : > { %s2485_s11 = smov 16   ;;  %s2486_s15 = smov 1  }
  0x46   : > { %2198 = dma.hbm_to_vmem [thread:$0]  (!%p2615_p12), %s2986_s0, 32, %s2619_s26, [#allocation4], %s2485_s11, %s2485_s11, %s2486_s15  }
  0x47   : > { %s2487_s28 = smov [#allocation8]   ;;  %s2381_s22 = scalar_lea.hbm %s2988_s2, 128 }
  0x48   : > { %s312_s14 = sshll.u32 %s2487_s28, 4  ;;  %p2382_p13 = scmp.ne.s32.totalorder %s2988_s2, %s2381_s22  ;;  %s313_s14 = int_to_ptr.vmem [resolvable:$true] %s312_s14 }
  0x49   : > { %p2388_p9 = scmp.lt.u32.totalorder %s2381_s22, %s2988_s2 }
  0x4a   : > { %p2384_p5 = pnand %p2382_p13, %p2629_p0 }
  0x4c   : > { %p2385_p6 = pneg %p2384_p5 }
  0x4e   : > { %p2390_p10 = pnand %p2388_p9, %p2385_p6 }
  0x50   : > { %2393 = shalt.err (!%p2390_p10)
}
  0x51   : > { %s2394_s26 = scalar_lea.vmem %s313_s14, 128  ;;  %p2402_p4 = scmp.lt.s32.totalorder %s313_s14, %s313_s14 }
  0x52   : > { %p2395_p1 = scmp.ne.s32.totalorder %s313_s14, %s2394_s26  ;;  %p2403_p7 = scmp.lt.s32.totalorder %s2394_s26, %s2394_s26 }
  0x54   : > { %p2397_p2 = pnand %p2395_p1, %p2629_p0  ;;  %p2404_p8 = por %p2403_p7, %p2402_p4 }
  0x56   : > { %p2398_p3 = pneg %p2397_p2 }
  0x58   : > { %p2405_p11 = pnand %p2404_p8, %p2398_p3 }
  0x5a   : > { %2408 = shalt.err (!%p2405_p11)
}
  0x5b   : > { %s2488_s11 = smov 64   ;;  %s2489_s15 = smov 4  }
  0x5c   : > { %2204 = dma.hbm_to_vmem [thread:$0]  (!%p2615_p12), %s2988_s2, 128, %s313_s14, [#allocation7], %s2488_s11, %s2488_s11, %s2489_s15  }
  0x5d   : > { %p3014_p13 = scmp.ne.s32.totalorder %s3010_s21, 0 }
  0x5e   : > { %p3015_p5 = scmp.eq.s32.totalorder (!%p3014_p13), %s2579_s13, 0 }
  0x5f   : > { %373 = sbr.rel (%p3014_p13) target bundleno = 4246 (0x1096), region = 56 }
  0x66   : > { %2454 = dma.done.wait (%p3015_p5), [#allocation4], 32   ;;  %p3016_p0 = pmov %p3015_p5 }
  0x68   : > { %2456 = vsyncadd (%p3016_p0), [#allocation4], 4294967264  ;;  %p3017_p6 = pmov %p3016_p0 }
  0x69   : > { %p3018_p9 = pmov %p3016_p0 }
  0x6a   : > { %2458 = dma.done.wait (%p3017_p6), [#allocation7], 384  }
  0x6b   : > { %2460 = vsyncadd (%p3018_p9), [#allocation7], 4294966912  ;;  %p439_p10 = scmp.lt.s32.totalorder %s2579_s13, 1  ;;  %v2490_v0 = vmov 0.0   ;;  %vm2491_vm0 = vmmov 0   ;;  %v2276_v3 = vld [vmem:[#allocation8] sm:$0xff]  }
  0x6c   : > { %2049 = vmatprep.subr.bf16.mxu0 %v2490_v0  ;;  %2053 = vmatprep.mubr.msk.bf16.mxu0 %vm2491_vm0, %v2490_v0  ;;  %vm500_vm1 = vcmask 261120   ;;  %s2492_s15 = smov 96   ;;  %vm564_vm2 = vcmask 64512   ;;  %v2747_v17 = vld [vmem:[#allocation3] ss:$0 sm:$0xff]  ;;  %s2493_s18 = smov 64  }
  0x6d   : > { %s2701_s21 = scalar_select %p439_p10, %s2579_s13, 1  ;;  %2057 = vmatprep.subr.bf16.mxu1 %v2490_v0  ;;  %2059 = vmatprep.mubr.msk.bf16.mxu1 %vm2491_vm0, %v2490_v0  ;;  %v2750_v22 = vld [vmem:[#allocation3 + $0x1] ss:$0 sm:$0xff]  ;;  %vm689_vm3 = vcmask 1043456   ;;  %vm1011_vm4 = vcmask 130112   ;;  %vm1242_vm5 = vcmask 195712  }
  0x6e   : > { %s2494_s1 = smov 88   ;;  %s2496_s17 = smov 56   ;;  %vm1473_vm6 = vcmask 261312   ;;  %vm1688_vm7 = vcmask 523264  }
  0x6f   : > { %s1998_s24 = sshll.u32 %s2701_s21, 4  ;;  %s446_s11 = scalar_lea.vmem %s2990_s4, %s2701_s21 }
  0x70   : > { %s443_s28 = scalar_lea.vmem %s2989_s3, %s1998_s24  ;;  %s2713_s29 = scalar_lea.vmem %s2991_s5, %s1998_s24  ;;  %v1959_v4 = vld [vmem:[%s446_s11] ss:$0 sm:$0xff] }
  0x71   : > { %v2274_v1 = vld [vmem:[%s443_s28] sm:$0xff]   ;;  %v2275_v2 = vld [vmem:[%s443_s28 + $0x8] sm:$0xff]   ;;  %s2718_s27 = scalar_lea.vmem %s2992_s6, %s1998_s24  ;;  %s2495_s24 = smov 120  }
  0x72   : > { %2050 = vmatpush3.bf16.msra.mxu0 %v2274_v1  ;;  %s2497_s20 = smov 80   ;;  %s2498_s28 = smov 112  }
  0x73   : > { %2051 = vmatprep.subr.bf16.mxu0 %v2490_v0  ;;  %s2499_s14 = smov 48   ;;  %s2500_s16 = smov 72  }
  0x74   : > { %s2501_s22 = smov 104   ;;  %s2502_s25 = smov 40  }
  0x75   : > { %s2503_s23 = smov 8   ;;  %s2504_s26 = smov 16  }
  0x76   : > { %2052 = vmatpush3.bf16.msra.mxu0 %v2275_v2  ;;  %s2505_s11 = smov 24   ;;  %p3019_p1 = scmp.ne.s32.totalorder %s3007_s19, 0 }
  0x77   : > { %2063 = vmatprep.subr.bf16.mxu0 %v2490_v0 }
  0x79   : > { %2054 = vmatmul.mubr.msk.bf16.vlgmr.msra.gmra.mrb[0].mxu0 %vm500_vm1, %v2276_v3 }
  0x7a   : > { %2065 = vmatprep.mubr.msk.bf16.mxu0 %vm2491_vm0, %v2490_v0 }
 0x14c   : > { %v538_v5 = vpop.f32.mrb[0].mxu0 }
 0x14d   : > { %v539_v6 = vadd.f32 %v1959_v4, %v538_v5  ;;  %v2055_v7 = vpop.f32.mrb[1].mxu0 }
 0x14e   : > { %v541_v8 = vpop.f32.mrb[2].mxu0 }
 0x14f   : > { %v2729_v9 = vpack.c.bf16 %v539_v6, %v539_v6  ;;  %v542_v10 = vadd.f32 %v1959_v4, %v541_v8  ;;  %v2056_v11 = vpop.f32.mrb[3].mxu0 }
 0x151   : > { %562 = vrot.lane.b32.xlu0 %v2729_v9, %s2492_s15  ;;  %v2732_v12 = vpack.c.bf16 %v542_v10, %v542_v10 }
 0x155   : > { %612 = vrot.lane.b32.xlu0 %v2732_v12, %s2492_s15  ;;  %s2506_s15 = smov [#allocation9]  }
 0x1c3   : > { %v563_v13 = vpop.permute.xlu0 %562 }
 0x1c4   : > { %v569_v14 = vsel %vm564_vm2, %v563_v13, 0 }
 0x1c5   : > { %2058 = vmatpush3.bf16.xpose.msra.mxu1 %v569_v14 }
 0x1c6   : > { %2069 = vmatprep.subr.bf16.mxu1 %v2490_v0 }
 0x1c7   : > { %v613_v15 = vpop.permute.xlu0 %612 }
 0x1c8   : > { %v618_v16 = vsel %vm564_vm2, %v613_v15, 0 }
 0x1c9   : > { %2064 = vmatpush3.bf16.xpose.msra.mxu0 %v618_v16 }
 0x1ca   : > { %2075 = vmatprep.subr.bf16.mxu0 %v2490_v0 }
 0x1cc   : > { %2060 = vmatmul.mubr.msk.bf16.vlgmr.msra.gmra.mrb[0].mxu1 %vm564_vm2, %v2729_v9 }
 0x1cd   : > { %2071 = vmatprep.mubr.msk.bf16.mxu1 %vm2491_vm0, %v2490_v0 }
 0x1d0   : > { %2066 = vmatmul.mubr.msk.bf16.vlgmr.msra.gmra.mrb[4].mxu0 %vm564_vm2, %v2732_v12 }
 0x1d1   : > { %2077 = vmatprep.mubr.msk.bf16.mxu0 %vm2491_vm0, %v2490_v0 }
 0x29f   : > { %v605_v18 = vpop.f32.mrb[0].mxu1 }
 0x2a0   : > { %v606_v19 = vadd.f32 %v2747_v17, %v605_v18  ;;  %v2061_v20 = vpop.f32.mrb[1].mxu1 }
 0x2a1   : > { %v608_v21 = vpop.f32.mrb[2].mxu1 }
 0x2a2   : > { %v2062_v23 = vpop.f32.mrb[3].mxu1  ;;  %v660_v24 = vsel %vm564_vm2, %v606_v19, -inf }
 0x2a3   : > { %661 = vmax.xlane.f32.xlu1 %v660_v24  ;;  %v654_v25 = vpop.f32.mrb[4].mxu0 }
 0x2a4   : > { %v655_v26 = vadd.f32 %v2750_v22, %v654_v25  ;;  %v2067_v27 = vpop.f32.mrb[5].mxu0 }
 0x2a5   : > { %v657_v28 = vpop.f32.mrb[6].mxu0 }
 0x2a6   : > { %v2068_v29 = vpop.f32.mrb[7].mxu0  ;;  %v663_v30 = vsel %vm564_vm2, %v655_v26, -inf }
 0x2a7   : > { %664 = vmax.xlane.f32.xlu1 %v663_v30 }
 0x2b8   : > { %684 = vrot.lane.b32.xlu1 %v2729_v9, %s2493_s18 }
 0x2bc   : > { %733 = vrot.lane.b32.xlu1 %v2732_v12, %s2493_s18  ;;  %s2413_s18 = sshll.u32 %s2506_s15, 4  ;;  %s2414_s18 = int_to_ptr.vmem [resolvable:$false] %s2413_s18 }
 0x2c0   : > { %785 = vrot.lane.b32.xlu1 %v2729_v9, %s2494_s1 }
 0x330   : > { %v662_v31 = vpop.xlane.xlu1 %661 }
 0x331   : > { %v666_v32 = vsub.f32 %v606_v19, %v662_v31 }
 0x333   : > { %v668_v33 = vmul.f32 1.442695, %v666_v32 }
 0x334   : > { %v665_v34 = vpop.xlane.xlu1 %664 }
 0x335   : > { %2285 = vpow2.f32 %v668_v33  ;;  %v667_v35 = vsub.f32 %v655_v26, %v665_v34 }
 0x337   : > { %v670_v36 = vmul.f32 1.442695, %v667_v35 }
 0x338   : > { %v685_v37 = vpop.permute.xlu1 %684 }
 0x339   : > { %2287 = vpow2.f32 %v670_v36  ;;  %v691_v38 = vsel %vm689_vm3, %v685_v37, 0 }
 0x33a   : > { %2070 = vmatpush3.bf16.msra.mxu1 %v691_v38 }
 0x33b   : > { %2081 = vmatprep.subr.bf16.mxu1 %v2490_v0 }
 0x33c   : > { %v734_v39 = vpop.permute.xlu1 %733 }
 0x33d   : > { %v739_v40 = vsel %vm689_vm3, %v734_v39, 0 }
 0x33e   : > { %2076 = vmatpush3.bf16.msra.mxu0 %v739_v40 }
 0x33f   : > { %v2286_v41 = vpop.eup %2285  ;;  %2087 = vmatprep.subr.bf16.mxu0 %v2490_v0 }
 0x340   : > { %v672_v42 = vsel %vm564_vm2, %v2286_v41, 0.0  ;;  %v786_v45 = vpop.permute.xlu1 %785 }
 0x341   : > { %673 = vadd.xlane.f32.xlu0 %v672_v42  ;;  %v791_v52 = vsel %vm564_vm2, %v786_v45, 0 }
 0x343   : > { %v2288_v43 = vpop.eup %2287 }
 0x344   : > { %v675_v44 = vsel %vm564_vm2, %v2288_v43, 0.0 }
 0x345   : > { %676 = vadd.xlane.f32.xlu1 %v675_v44 }
 0x356   : > { %835 = vrot.lane.b32.xlu1 %v2732_v12, %s2494_s1 }
 0x357   : > { %783 = vrot.lane.b32.xlu0 %v2729_v9, %s2495_s24 }
 0x35a   : > { %833 = vrot.lane.b32.xlu1 %v2732_v12, %s2495_s24  ;;  %s2001_s24 = sshll.u32 %s2701_s21, 5 }
 0x3ce   : > { %v674_v46 = vpop.xlane.xlu0 %673 }
 0x3cf   : > { %2289 = vrcp.f32 %v674_v46 }
 0x3d2   : > { %v677_v47 = vpop.xlane.xlu1 %676  ;;  %v784_v57 = vpop.permute.xlu0 %783 }
 0x3d3   : > { %2291 = vrcp.f32 %v677_v47 }
 0x3d6   : > { %v836_v54 = vpop.permute.xlu1 %835 }
 0x3d7   : > { %v841_v56 = vsel %vm564_vm2, %v836_v54, 0 }
 0x3d9   : > { %v2290_v48 = vpop.eup %2289 }
 0x3da   : > { %v680_v49 = vmul.f32 %v2290_v48, %v2286_v41  ;;  %v834_v58 = vpop.permute.xlu1 %833 }
 0x3dc   : > { %v682_v50 = vpack.c.bf16 %v680_v49, %v680_v49 }
 0x3dd   : > { %v2292_v51 = vpop.eup %2291 }
 0x3de   : > { %v681_v53 = vmul.f32 %v2292_v51, %v2288_v43  ;;  %2072 = vmatmul.mubr.msk.bf16.vlgmr.msra.gmra.mrb[4].mxu1 %vm564_vm2, %v682_v50 }
 0x3df   : > { %2082 = vmatpush3.bf16.xpose.msra.mxu1 %v791_v52  ;;  %2083 = vmatprep.mubr.msk.bf16.mxu1 %vm2491_vm0, %v2490_v0 }
 0x3e0   : > { %v683_v55 = vpack.c.bf16 %v681_v53, %v681_v53  ;;  %2093 = vmatprep.subr.bf16.mxu1 %v2490_v0 }
 0x3e2   : > { %2078 = vmatmul.mubr.msk.bf16.vlgmr.msra.gmra.mrb[8].mxu0 %vm564_vm2, %v683_v55 }
 0x3e3   : > { %2088 = vmatpush3.bf16.xpose.msra.mxu0 %v841_v56  ;;  %2089 = vmatprep.mubr.msk.bf16.mxu0 %vm2491_vm0, %v2490_v0 }
 0x3e4   : > { %2099 = vmatprep.subr.bf16.mxu0 %v2490_v0 }
 0x3e6   : > { %2084 = vmatmul.mubr.msk.bf16.vlgmr.msra.gmra.mrb[8].mxu1 %vm564_vm2, %v784_v57 }
 0x3e7   : > { %2095 = vmatprep.mubr.msk.bf16.mxu1 %vm2491_vm0, %v2490_v0 }
 0x3ea   : > { %2090 = vmatmul.mubr.msk.bf16.vlgmr.msra.gmra.mrb[12].mxu0 %vm564_vm2, %v834_v58 }
 0x3eb   : > { %2101 = vmatprep.mubr.msk.bf16.mxu0 %vm2491_vm0, %v2490_v0 }
 0x4b1   : > { %v727_v59 = vpop.f32.mrb[4].mxu1 }
 0x4b2   : > { %781 = vst.msk [vmem:[#allocation2] sm:$0xff] %vm564_vm2, %v727_v59  ;;  %v2073_v60 = vpop.f32.mrb[5].mxu1 }
 0x4b3   : > { %v730_v61 = vpop.f32.mrb[6].mxu1 }
 0x4b4   : > { %v2074_v62 = vpop.f32.mrb[7].mxu1 }
 0x4b5   : > { %v775_v63 = vpop.f32.mrb[8].mxu0 }
 0x4b6   : > { %782 = vst.msk [vmem:[#allocation2 + $0x8] sm:$0xff] %vm564_vm2, %v775_v63  ;;  %v2079_v1 = vpop.f32.mrb[9].mxu0 }
 0x4b7   : > { %v778_v2 = vpop.f32.mrb[10].mxu0 }
 0x4b8   : > { %v2080_v3 = vpop.f32.mrb[11].mxu0 }
 0x4b9   : > { %v827_v4 = vpop.f32.mrb[8].mxu1 }
 0x4ba   : > { %v828_v5 = vadd.f32 %v2747_v17, %v827_v4  ;;  %v2085_v6 = vpop.f32.mrb[9].mxu1 }
 0x4bb   : > { %v830_v7 = vpop.f32.mrb[10].mxu1 }
 0x4bc   : > { %v2086_v8 = vpop.f32.mrb[11].mxu1  ;;  %v883_v10 = vsel %vm564_vm2, %v828_v5, -inf }
 0x4bd   : > { %884 = vmax.xlane.f32.xlu1 %v883_v10  ;;  %v877_v11 = vpop.f32.mrb[12].mxu0 }
 0x4be   : > { %v878_v13 = vadd.f32 %v2750_v22, %v877_v11  ;;  %v2091_v14 = vpop.f32.mrb[13].mxu0 }
 0x4bf   : > { %v880_v15 = vpop.f32.mrb[14].mxu0 }
 0x4c0   : > { %v2092_v16 = vpop.f32.mrb[15].mxu0  ;;  %v886_v18 = vsel %vm564_vm2, %v878_v13, -inf }
 0x4c1   : > { %887 = vmax.xlane.f32.xlu0 %v886_v18 }
 0x4ce   : > { %907 = vrot.lane.b32.xlu1 %v2729_v9, %s2496_s17 }
 0x4d2   : > { %1016 = vrot.lane.b32.xlu1 %v2729_v9, %s2497_s20 }
 0x4d7   : > { %955 = vrot.lane.b32.xlu0 %v2732_v12, %s2496_s17 }
 0x4db   : > { %1014 = vrot.lane.b32.xlu0 %v2729_v9, %s2498_s28 }
 0x54a   : > { %v885_v19 = vpop.xlane.xlu1 %884 }
 0x54b   : > { %v889_v20 = vsub.f32 %v828_v5, %v885_v19 }
 0x54d   : > { %v891_v21 = vmul.f32 1.442695, %v889_v20 }
 0x54e   : > { %v908_v23 = vpop.permute.xlu1 %907  ;;  %v888_v24 = vpop.xlane.xlu0 %887 }
 0x54f   : > { %2293 = vpow2.f32 %v891_v21  ;;  %v913_v25 = vsel %vm689_vm3, %v908_v23, 0  ;;  %v890_v26 = vsub.f32 %v878_v13, %v888_v24 }
 0x550   : > { %2094 = vmatpush3.bf16.msra.mxu1 %v913_v25 }
 0x551   : > { %v893_v27 = vmul.f32 1.442695, %v890_v26  ;;  %2105 = vmatprep.subr.bf16.mxu1 %v2490_v0 }
 0x552   : > { %v956_v28 = vpop.permute.xlu0 %955  ;;  %v1017_v34 = vpop.permute.xlu1 %1016 }
 0x553   : > { %2295 = vpow2.f32 %v893_v27  ;;  %v961_v29 = vsel %vm689_vm3, %v956_v28, 0  ;;  %v1022_v41 = vsel %vm564_vm2, %v1017_v34, 0 }
 0x554   : > { %2100 = vmatpush3.bf16.msra.mxu0 %v961_v29 }
 0x555   : > { %2111 = vmatprep.subr.bf16.mxu0 %v2490_v0 }
 0x556   : > { %v1015_v46 = vpop.permute.xlu0 %1014 }
 0x559   : > { %v2294_v30 = vpop.eup %2293 }
 0x55a   : > { %v895_v31 = vsel %vm564_vm2, %v2294_v30, 0.0 }
 0x55b   : > { %896 = vadd.xlane.f32.xlu1 %v895_v31 }
 0x55d   : > { %v2296_v32 = vpop.eup %2295 }
 0x55e   : > { %v898_v33 = vsel %vm564_vm2, %v2296_v32, 0.0 }
 0x55f   : > { %899 = vadd.xlane.f32.xlu1 %v898_v33 }
 0x570   : > { %1066 = vrot.lane.b32.xlu1 %v2732_v12, %s2497_s20 }
 0x574   : > { %1064 = vrot.lane.b32.xlu1 %v2732_v12, %s2498_s28  ;;  %s2907_s28 = scalar_lea.vmem %s2993_s7, %s2001_s24 }
 0x5e8   : > { %v897_v35 = vpop.xlane.xlu1 %896 }
 0x5e9   : > { %2297 = vrcp.f32 %v897_v35 }
 0x5ec   : > { %v900_v36 = vpop.xlane.xlu1 %899 }
 0x5ed   : > { %2299 = vrcp.f32 %v900_v36 }
 0x5f0   : > { %v1067_v43 = vpop.permute.xlu1 %1066 }
 0x5f1   : > { %v1072_v45 = vsel %vm564_vm2, %v1067_v43, 0 }
 0x5f3   : > { %v2298_v37 = vpop.eup %2297 }
 0x5f4   : > { %v903_v38 = vmul.f32 %v2298_v37, %v2294_v30  ;;  %v1065_v47 = vpop.permute.xlu1 %1064 }
 0x5f6   : > { %v905_v39 = vpack.c.bf16 %v903_v38, %v903_v38 }
 0x5f7   : > { %v2300_v40 = vpop.eup %2299 }
 0x5f8   : > { %v904_v42 = vmul.f32 %v2300_v40, %v2296_v32  ;;  %2096 = vmatmul.mubr.msk.bf16.vlgmr.msra.gmra.mrb[12].mxu1 %vm564_vm2, %v905_v39 }
 0x5f9   : > { %2106 = vmatpush3.bf16.xpose.msra.mxu1 %v1022_v41  ;;  %2107 = vmatprep.mubr.msk.bf16.mxu1 %vm2491_vm0, %v2490_v0 }
 0x5fa   : > { %v906_v44 = vpack.c.bf16 %v904_v42, %v904_v42  ;;  %2117 = vmatprep.subr.bf16.mxu1 %v2490_v0 }
 0x5fc   : > { %2102 = vmatmul.mubr.msk.bf16.vlgmr.msra.gmra.mrb[16].mxu0 %vm564_vm2, %v906_v44 }
 0x5fd   : > { %2112 = vmatpush3.bf16.xpose.msra.mxu0 %v1072_v45  ;;  %2113 = vmatprep.mubr.msk.bf16.mxu0 %vm2491_vm0, %v2490_v0 }
 0x5fe   : > { %2123 = vmatprep.subr.bf16.mxu0 %v2490_v0 }
 0x600   : > { %2108 = vmatmul.mubr.msk.bf16.vlgmr.msra.gmra.mrb[16].mxu1 %vm564_vm2, %v1015_v46 }
 0x601   : > { %2119 = vmatprep.mubr.msk.bf16.mxu1 %vm2491_vm0, %v2490_v0 }
 0x604   : > { %2114 = vmatmul.mubr.msk.bf16.vlgmr.msra.gmra.mrb[20].mxu0 %vm564_vm2, %v1065_v47 }
 0x605   : > { %2125 = vmatprep.mubr.msk.bf16.mxu0 %vm2491_vm0, %v2490_v0 }
 0x6cb   : > { %v2817_v48 = vpop.f32.mrb[12].mxu1 }
 0x6cc   : > { %v2097_v49 = vpop.f32.mrb[13].mxu1 }
 0x6cd   : > { %v952_v50 = vpop.f32.mrb[14].mxu1 }
 0x6ce   : > { %v2098_v51 = vpop.f32.mrb[15].mxu1 }
 0x6cf   : > { %v2819_v52 = vpop.f32.mrb[16].mxu0 }
 0x6d0   : > { %v2103_v53 = vpop.f32.mrb[17].mxu0 }
 0x6d1   : > { %v1000_v54 = vpop.f32.mrb[18].mxu0 }
 0x6d2   : > { %v2104_v55 = vpop.f32.mrb[19].mxu0 }
 0x6d3   : > { %v1058_v56 = vpop.f32.mrb[16].mxu1 }
 0x6d4   : > { %v1059_v57 = vadd.f32 %v2747_v17, %v1058_v56  ;;  %v2109_v58 = vpop.f32.mrb[17].mxu1 }
 0x6d5   : > { %v1061_v59 = vpop.f32.mrb[18].mxu1 }
 0x6d6   : > { %v2110_v60 = vpop.f32.mrb[19].mxu1  ;;  %v1114_v61 = vsel %vm564_vm2, %v1059_v57, -inf }
 0x6d7   : > { %1115 = vmax.xlane.f32.xlu0 %v1114_v61  ;;  %v1108_v62 = vpop.f32.mrb[20].mxu0 }
 0x6d8   : > { %v1109_v63 = vadd.f32 %v2750_v22, %v1108_v62  ;;  %v2115_v1 = vpop.f32.mrb[21].mxu0 }
 0x6d9   : > { %v1111_v2 = vpop.f32.mrb[22].mxu0 }
 0x6da   : > { %v2116_v3 = vpop.f32.mrb[23].mxu0  ;;  %v1117_v4 = vsel %vm564_vm2, %v1109_v63, -inf }
 0x6db   : > { %1118 = vmax.xlane.f32.xlu1 %v1117_v4 }
 0x6ec   : > { %1138 = vrot.lane.b32.xlu1 %v2729_v9, %s2499_s14 }
 0x6f0   : > { %1247 = vrot.lane.b32.xlu1 %v2729_v9, %s2500_s16 }
 0x6f4   : > { %1297 = vrot.lane.b32.xlu1 %v2732_v12, %s2500_s16 }
 0x6f8   : > { %1295 = vrot.lane.b32.xlu1 %v2732_v12, %s2501_s22 }
 0x764   : > { %v1116_v5 = vpop.xlane.xlu0 %1115 }
 0x765   : > { %v1120_v6 = vsub.f32 %v1059_v57, %v1116_v5 }
 0x767   : > { %v1122_v7 = vmul.f32 1.442695, %v1120_v6 }
 0x768   : > { %v1119_v8 = vpop.xlane.xlu1 %1118 }
 0x769   : > { %2301 = vpow2.f32 %v1122_v7  ;;  %v1121_v10 = vsub.f32 %v1109_v63, %v1119_v8 }
 0x76b   : > { %v1124_v11 = vmul.f32 1.442695, %v1121_v10 }
 0x76c   : > { %v1139_v13 = vpop.permute.xlu1 %1138 }
 0x76d   : > { %2303 = vpow2.f32 %v1124_v11  ;;  %v1144_v14 = vsel %vm689_vm3, %v1139_v13, 0 }
 0x76e   : > { %2118 = vmatpush3.bf16.msra.mxu1 %v1144_v14 }
 0x76f   : > { %2129 = vmatprep.subr.bf16.mxu1 %v2490_v0 }
 0x770   : > { %v1248_v26 = vpop.permute.xlu1 %1247 }
 0x771   : > { %v1253_v30 = vsel %vm564_vm2, %v1248_v26, 0 }
 0x773   : > { %v2302_v15 = vpop.eup %2301 }
 0x774   : > { %v1126_v16 = vsel %vm564_vm2, %v2302_v15, 0.0  ;;  %v1298_v32 = vpop.permute.xlu1 %1297 }
 0x775   : > { %1127 = vadd.xlane.f32.xlu0 %v1126_v16  ;;  %v1303_v34 = vsel %vm564_vm2, %v1298_v32, 0 }
 0x777   : > { %v2304_v18 = vpop.eup %2303 }
 0x778   : > { %v1129_v19 = vsel %vm564_vm2, %v2304_v18, 0.0  ;;  %v1296_v36 = vpop.permute.xlu1 %1295 }
 0x779   : > { %1130 = vadd.xlane.f32.xlu0 %v1129_v19  ;;  %v2277_v19 = vld [vmem:[%s2713_s29] sm:$0xff]  }
 0x78f   : > { %1186 = vrot.lane.b32.xlu0 %v2732_v12, %s2499_s14  ;;  %s2002_s14 = sshll.u32 %s2579_s13, 8 }
 0x793   : > { %1245 = vrot.lane.b32.xlu0 %v2729_v9, %s2501_s22 }
 0x802   : > { %v1128_v20 = vpop.xlane.xlu0 %1127 }
 0x803   : > { %2305 = vrcp.f32 %v1128_v20  ;;  %v2278_v20 = vld [vmem:[%s2713_s29 + $0x8] sm:$0xff]   ;;  %s1958_s29 = sshll.u32 %s2701_s21, 3  ;;  %s436_s21 = sand.u32 1, %s2471_s10  }
 0x804   : > { %s465_s1 = scalar_lea.vmem %s2994_s8, %s1958_s29  ;;  %s2944_s13 = scalar_lea.sflag [#allocation5], %s436_s21 }
 0x806   : > { %v1131_v21 = vpop.xlane.xlu0 %1130 }
 0x807   : > { %2307 = vrcp.f32 %v1131_v21 }
 0x80a   : > { %v1187_v23 = vpop.permute.xlu0 %1186 }
 0x80b   : > { %v1192_v24 = vsel %vm689_vm3, %v1187_v23, 0 }
 0x80c   : > { %2124 = vmatpush3.bf16.msra.mxu0 %v1192_v24 }
 0x80d   : > { %v2306_v25 = vpop.eup %2305  ;;  %2135 = vmatprep.subr.bf16.mxu0 %v2490_v0 }
 0x80e   : > { %v1134_v27 = vmul.f32 %v2306_v25, %v2302_v15  ;;  %v1246_v35 = vpop.permute.xlu0 %1245 }
 0x810   : > { %v1136_v28 = vpack.c.bf16 %v1134_v27, %v1134_v27 }
 0x811   : > { %v2308_v29 = vpop.eup %2307 }
 0x812   : > { %v1135_v31 = vmul.f32 %v2308_v29, %v2304_v18  ;;  %2120 = vmatmul.mubr.msk.bf16.vlgmr.msra.gmra.mrb[20].mxu1 %vm564_vm2, %v1136_v28 }
 0x813   : > { %2130 = vmatpush3.bf16.xpose.msra.mxu1 %v1253_v30  ;;  %2131 = vmatprep.mubr.msk.bf16.mxu1 %vm2491_vm0, %v2490_v0 }
 0x814   : > { %v1137_v33 = vpack.c.bf16 %v1135_v31, %v1135_v31  ;;  %2141 = vmatprep.subr.bf16.mxu1 %v2490_v0 }
 0x816   : > { %2126 = vmatmul.mubr.msk.bf16.vlgmr.msra.gmra.mrb[24].mxu0 %vm564_vm2, %v1137_v33 }
 0x817   : > { %2136 = vmatpush3.bf16.xpose.msra.mxu0 %v1303_v34  ;;  %2137 = vmatprep.mubr.msk.bf16.mxu0 %vm2491_vm0, %v2490_v0 }
 0x818   : > { %2147 = vmatprep.subr.bf16.mxu0 %v2490_v0 }
 0x81a   : > { %2132 = vmatmul.mubr.msk.bf16.vlgmr.msra.gmra.mrb[24].mxu1 %vm564_vm2, %v1246_v35  ;;  %v1483_v35 = vlaneseq }
 0x81b   : > { %2143 = vmatprep.mubr.msk.bf16.mxu1 %vm2491_vm0, %v2490_v0 }
 0x81e   : > { %2138 = vmatmul.mubr.msk.bf16.vlgmr.msra.gmra.mrb[28].mxu0 %vm564_vm2, %v1296_v36  ;;  %v2887_v36 = vshrl.u32 %v1483_v35, 7 }
 0x81f   : > { %2149 = vmatprep.mubr.msk.bf16.mxu0 %vm2491_vm0, %v2490_v0 }
 0x820   : > { %v1662_v35 = vsub.s32 4, %v2887_v36 }
 0x8e5   : > { %v1180_v37 = vpop.f32.mrb[20].mxu1 }
 0x8e6   : > { %v2121_v38 = vpop.f32.mrb[21].mxu1 }
 0x8e7   : > { %v1183_v39 = vpop.f32.mrb[22].mxu1  ;;  %v2893_v38 = vld [vmem:[%s465_s1] sm:$0xff]  ;;  %s2415_s1 = scalar_lea.vmem %s2414_s18, 512 }
 0x8e8   : > { %v2122_v40 = vpop.f32.mrb[23].mxu1 }
 0x8e9   : > { %v1228_v41 = vpop.f32.mrb[24].mxu0 }
 0x8ea   : > { %v2127_v42 = vpop.f32.mrb[25].mxu0 }
 0x8eb   : > { %v1231_v43 = vpop.f32.mrb[26].mxu0 }
 0x8ec   : > { %v2128_v44 = vpop.f32.mrb[27].mxu0 }
 0x8ed   : > { %v1289_v45 = vpop.f32.mrb[24].mxu1 }
 0x8ee   : > { %v1290_v46 = vadd.f32 %v2747_v17, %v1289_v45  ;;  %v2133_v47 = vpop.f32.mrb[25].mxu1  ;;  %v468_v45 = vld [vmem:[#allocation6 + $0x8] sm:$0xff] }
 0x8ef   : > { %v1292_v49 = vpop.f32.mrb[26].mxu1 }
 0x8f0   : > { %v2134_v50 = vpop.f32.mrb[27].mxu1  ;;  %v1345_v51 = vsel %vm564_vm2, %v1290_v46, -inf }
 0x8f1   : > { %1346 = vmax.xlane.f32.xlu0 %v1345_v51  ;;  %v1339_v53 = vpop.f32.mrb[28].mxu0 }
 0x8f2   : > { %v1340_v54 = vadd.f32 %v2750_v22, %v1339_v53  ;;  %v2139_v55 = vpop.f32.mrb[29].mxu0 }
 0x8f3   : > { %v1342_v56 = vpop.f32.mrb[30].mxu0 }
 0x8f4   : > { %v2140_v57 = vpop.f32.mrb[31].mxu0  ;;  %v1348_v58 = vsel %vm564_vm2, %v1340_v54, -inf }
 0x8f5   : > { %1349 = vmax.xlane.f32.xlu1 %v1348_v58 }
 0x906   : > { %1369 = vrot.lane.b32.xlu1 %v2729_v9, %s2502_s25 }
 0x90a   : > { %1005 = vrot.lane.b32.xlu1 %v2817_v48, %s2503_s23 }
 0x90e   : > { %1007 = vrot.lane.b32.xlu1 %v2819_v52, %s2503_s23 }
 0x912   : > { %1238 = vrot.lane.b32.xlu1 %v1228_v41, %s2504_s26  ;;  %v467_v41 = vld [vmem:[#allocation6] sm:$0xff] }
 0x97e   : > { %v1347_v17 = vpop.xlane.xlu0 %1346 }
 0x97f   : > { %v1351_v22 = vsub.f32 %v1290_v46, %v1347_v17 }
 0x981   : > { %v1353_v59 = vmul.f32 1.442695, %v1351_v22 }
 0x982   : > { %v1350_v60 = vpop.xlane.xlu1 %1349 }
 0x983   : > { %2309 = vpow2.f32 %v1353_v59  ;;  %v1352_v61 = vsub.f32 %v1340_v54, %v1350_v60 }
 0x985   : > { %v1355_v62 = vmul.f32 1.442695, %v1352_v61 }
 0x986   : > { %v1370_v63 = vpop.permute.xlu1 %1369 }
 0x987   : > { %2311 = vpow2.f32 %v1355_v62  ;;  %v1375_v9 = vsel %vm689_vm3, %v1370_v63, 0  ;;  %v2279_v62 = vld [vmem:[%s2718_s27] sm:$0xff]   ;;  %v2280_v63 = vld [vmem:[%s2718_s27 + $0x8] sm:$0xff]   ;;  %s1949_s27 = sshll.u32 %s436_s21, 4 }
 0x988   : > { %2142 = vmatpush3.bf16.msra.mxu1 %v1375_v9  ;;  %v2281_v9 = vld [vmem:[%s2907_s28] sm:$0xff]   ;;  %s438_s16 = scalar_lea.vmem [#allocation9], %s1949_s27 }
 0x989   : > { %2153 = vmatprep.subr.bf16.mxu1 %v2490_v0  ;;  %s1789_s22 = sshll.u32 %s438_s16, 4  ;;  %s2941_s22 = int_to_ptr.vmem [resolvable:$true] %s1789_s22 }
 0x98a   : > { %v1006_v48 = vpop.permute.xlu1 %1005  ;;  %s2409_s29 = scalar_lea.vmem %s2941_s22, 256  ;;  %p2416_p4 = scmp.lt.s32.totalorder %s2941_s22, %s2414_s18 }
 0x98b   : > { %1012 = vst.msk [vmem:[#allocation2] sm:$0xff] %vm1011_vm4, %v1006_v48  ;;  %v2282_v48 = vld [vmem:[%s2907_s28 + $0x8] sm:$0xff]   ;;  %p2410_p12 = scmp.ne.s32.totalorder %s2941_s22, %s2409_s29  ;;  %p2417_p7 = scmp.lt.s32.totalorder %s2415_s1, %s2409_s29 }
 0x98d   : > { %v2310_v52 = vpop.eup %2309  ;;  %p2411_p2 = pnand %p2410_p12, %p3019_p1  ;;  %p2418_p8 = por %p2417_p7, %p2416_p4 }
 0x98e   : > { %v1008_v1 = vpop.permute.xlu1 %1007  ;;  %v1357_v2 = vsel %vm564_vm2, %v2310_v52, 0.0 }
 0x98f   : > { %1013 = vst.msk [vmem:[#allocation2 + $0x8] sm:$0xff] %vm1011_vm4, %v1008_v1  ;;  %1358 = vadd.xlane.f32.xlu0 %v1357_v2  ;;  %p2412_p3 = pneg %p2411_p2 }
 0x991   : > { %v2312_v3 = vpop.eup %2311  ;;  %p2419_p11 = pnand %p2418_p8, %p2412_p3 }
 0x992   : > { %v1239_v4 = vpop.permute.xlu1 %1238  ;;  %v1360_v5 = vsel %vm564_vm2, %v2312_v3, 0.0 }
 0x993   : > { %1244 = vst.msk [vmem:[#allocation2 + $0x8] sm:$0xff] %vm1242_vm5, %v1239_v4  ;;  %1361 = vadd.xlane.f32.xlu0 %v1360_v5 }
 0x9a9   : > { %1417 = vrot.lane.b32.xlu0 %v2732_v12, %s2502_s25 }
 0x9ad   : > { %1236 = vrot.lane.b32.xlu0 %v1180_v37, %s2504_s26  ;;  %v1485_v37 = vsub.s32 0, %v2887_v36 }
 0x9af   : > { %v1486_v39 = vrot.slane %v2893_v38, %v1485_v37 }
 0xa1c   : > { %v1359_v6 = vpop.xlane.xlu0 %1358 }
 0xa1d   : > { %2313 = vrcp.f32 %v1359_v6  ;;  %v1574_v6 = vsub.s32 1, %v2887_v36 }
 0xa20   : > { %v1362_v7 = vpop.xlane.xlu0 %1361 }
 0xa21   : > { %2315 = vrcp.f32 %v1362_v7 }
 0xa24   : > { %v1418_v8 = vpop.permute.xlu0 %1417 }
 0xa25   : > { %v1423_v10 = vsel %vm689_vm3, %v1418_v8, 0  ;;  %v1575_v8 = vrot.slane %v2893_v38, %v1574_v6 }
 0xa26   : > { %2148 = vmatpush3.bf16.msra.mxu0 %v1423_v10 }
 0xa27   : > { %v2314_v11 = vpop.eup %2313  ;;  %2161 = vmatprep.subr.bf16.mxu0 %v2490_v0 }
 0xa28   : > { %v1365_v13 = vmul.f32 %v2314_v11, %v2310_v52  ;;  %v1237_v14 = vpop.permute.xlu0 %1236  ;;  %v1580_v11 = vsub.s32 2, %v2887_v36 }
 0xa29   : > { %1243 = vst.msk [vmem:[#allocation2] sm:$0xff] %vm1242_vm5, %v1237_v14 }
 0xa2a   : > { %v1367_v15 = vpack.c.bf16 %v1365_v13, %v1365_v13 }
 0xa2b   : > { %v2316_v12 = vpop.eup %2315 }
 0xa2c   : > { %v1366_v16 = vmul.f32 %v2316_v12, %v2312_v3  ;;  %2144 = vmatmul.mubr.msk.bf16.vlgmr.msra.gmra.mrb[28].mxu1 %vm564_vm2, %v1367_v15  ;;  %v1581_v12 = vrot.slane %v2893_v38, %v1580_v11 }
 0xa2d   : > { %2157 = vmatprep.mubr.msk.bf16.mxu1 %vm2491_vm0, %v2490_v0  ;;  %2154 = vmatpush3.bf16.msra.mxu1 %v2277_v19 }
 0xa2e   : > { %v1368_v18 = vpack.c.bf16 %v1366_v16, %v1366_v16  ;;  %2155 = vmatprep.subr.bf16.mxu1 %v2490_v0 }
 0xa30   : > { %2150 = vmatmul.mubr.msk.bf16.vlgmr.msra.gmra.mrb[32].mxu0 %vm564_vm2, %v1368_v18 }
 0xa31   : > { %2165 = vmatprep.mubr.msk.bf16.mxu0 %vm2491_vm0, %v2490_v0  ;;  %2156 = vmatpush3.bf16.msra.mxu1 %v2278_v20 }
 0xa32   : > { %2169 = vmatprep.subr.bf16.mxu1 %v2490_v0  ;;  %2162 = vmatpush3.bf16.msra.mxu0 %v2279_v62 }
 0xa33   : > { %2163 = vmatprep.subr.bf16.mxu0 %v2490_v0 }
 0xa36   : > { %2164 = vmatpush3.bf16.msra.mxu0 %v2280_v63 }
 0xaff   : > { %v1411_v21 = vpop.f32.mrb[28].mxu1 }
 0xb00   : > { %1467 = vrot.lane.b32.xlu0 %v1411_v21, %s2505_s11  ;;  %v2145_v23 = vpop.f32.mrb[29].mxu1  ;;  %v2283_v21 = vld [vmem:[%s2907_s28 + $0x10] sm:$0xff]  }
 0xb01   : > { %v1414_v24 = vpop.f32.mrb[30].mxu1  ;;  %v2284_v23 = vld [vmem:[%s2907_s28 + $0x18] sm:$0xff]  }
 0xb02   : > { %v2146_v25 = vpop.f32.mrb[31].mxu1  ;;  %v1591_v24 = vsub.s32 3, %v2887_v36 }
 0xb03   : > { %v1459_v26 = vpop.f32.mrb[32].mxu0 }
 0xb04   : > { %1469 = vrot.lane.b32.xlu1 %v1459_v26, %s2505_s11  ;;  %v2151_v27 = vpop.f32.mrb[33].mxu0  ;;  %v1592_v25 = vrot.slane %v2893_v38, %v1591_v24  ;;  %s2938_s11 = scalar_lea.hbm %s2995_s9, %s2002_s14 }
 0xb05   : > { %v1462_v28 = vpop.f32.mrb[34].mxu0 }
 0xb06   : > { %v2152_v29 = vpop.f32.mrb[35].mxu0 }
 0xb72   : > { %v1468_v30 = vpop.permute.xlu0 %1467 }
 0xb73   : > { %1474 = vst.msk [vmem:[#allocation2] sm:$0xff] %vm1473_vm6, %v1468_v30 }
 0xb76   : > { %v1470_v31 = vpop.permute.xlu1 %1469 }
 0xb77   : > { %1475 = vst.msk [vmem:[#allocation2 + $0x8] sm:$0xff] %vm1473_vm6, %v1470_v31 }
 0xb7a   : > { %v1476_v32 = vld [vmem:[#allocation2] sm:$0xff] }
 0xb7e   : > { %v1477_v33 = vld [vmem:[#allocation2 + $0x8] sm:$0xff] }
 0xb7f   : > { %v1478_v34 = vpack.c.bf16 %v1477_v33, %v1476_v32 }
 0xb81   : > { %2158 = vmatmul.mubr.msk.bf16.vlgmr.msra.gmra.mrb[32].mxu1 %vm500_vm1, %v1478_v34 }
 0xb82   : > { %2177 = vmatprep.mubr.msk.bf16.mxu1 %vm2491_vm0, %v2490_v0  ;;  %2170 = vmatpush3.bf16.msra.mxu1 %v2281_v9  ;;  %v1763_v9 = vsub.s32 5, %v2887_v36 }
 0xb83   : > { %2171 = vmatprep.subr.bf16.mxu1 %v2490_v0 }
 0xb86   : > { %2172 = vmatpush3.bf16.msra.mxu1 %v2282_v48  ;;  %v1769_v48 = vsub.s32 6, %v2887_v36 }
 0xb87   : > { %2173 = vmatprep.subr.bf16.mxu1 %v2490_v0 }
 0xb8a   : > { %2174 = vmatpush3.bf16.msra.mxu1 %v2283_v21 }
 0xb8b   : > { %2175 = vmatprep.subr.bf16.mxu1 %v2490_v0  ;;  %v1663_v0 = vrot.slane %v2893_v38, %v1662_v35 }
 0xb8e   : > { %2176 = vmatpush3.bf16.msra.mxu1 %v2284_v23 }
 0xc54   : > { %v1536_v40 = vpop.f32.mrb[32].mxu1 }
 0xc55   : > { %v1537_v42 = vadd.f32 %v1536_v40, %v1486_v39  ;;  %v2159_v43 = vpop.f32.mrb[33].mxu1 }
 0xc56   : > { %v1539_v44 = vpop.f32.mrb[34].mxu1 }
 0xc57   : > { %v1540_v46 = vadd.f32 %v1539_v44, %v1486_v39  ;;  %v2160_v47 = vpop.f32.mrb[35].mxu1  ;;  %v1543_v49 = vadd.f32 %v1537_v42, %v467_v41 }
 0xc59   : > { %v1545_v50 = vsel %vm500_vm1, %v1543_v49, 0.0  ;;  %v1544_v51 = vadd.f32 %v1540_v46, %v468_v45 }
 0xc5a   : > { %1546 = vadd.xlane.f32.xlu0 %v1545_v50 }
 0xc5b   : > { %v1548_v53 = vsel %vm500_vm1, %v1544_v51, 0.0 }
 0xc5c   : > { %1549 = vadd.xlane.f32.xlu1 %v1548_v53 }
 0xce7   : > { %v1547_v54 = vpop.xlane.xlu0 %1546 }
 0xce8   : > { %v1552_v55 = vmul.f32 0.03125, %v1547_v54 }
 0xce9   : > { %v1550_v56 = vpop.xlane.xlu1 %1549 }
 0xcea   : > { %v1554_v57 = vsub.f32 %v1543_v49, %v1552_v55  ;;  %v1553_v58 = vmul.f32 0.03125, %v1550_v56 }
 0xcec   : > { %v1555_v17 = vsub.f32 %v1544_v51, %v1553_v58  ;;  %v1556_v22 = vmul.f32 %v1554_v57, %v1554_v57 }
 0xcee   : > { %v1558_v59 = vsel %vm500_vm1, %v1556_v22, 0.0  ;;  %v1557_v60 = vmul.f32 %v1555_v17, %v1555_v17 }
 0xcef   : > { %1559 = vadd.xlane.f32.xlu0 %v1558_v59 }
 0xcf0   : > { %v1561_v61 = vsel %vm500_vm1, %v1557_v60, 0.0 }
 0xcf3   : > { %1562 = vadd.xlane.f32.xlu0 %v1561_v61 }
 0xd7c   : > { %v1560_v52 = vpop.xlane.xlu0 %1559 }
 0xd7d   : > { %v1564_v1 = vmul.f32 0.03125, %v1560_v52  ;;  %v1764_v52 = vrot.slane %v2893_v38, %v1763_v9 }
 0xd7f   : > { %v1566_v2 = vadd.f32 1e-05, %v1564_v1 }
 0xd80   : > { %v1563_v3 = vpop.xlane.xlu0 %1562 }
 0xd81   : > { %2317 = vrsqrt.f32 %v1566_v2  ;;  %v1565_v4 = vmul.f32 0.03125, %v1563_v3  ;;  %v1770_v2 = vrot.slane %v2893_v38, %v1769_v48 }
 0xd83   : > { %v1567_v5 = vadd.f32 1e-05, %v1565_v4 }
 0xd85   : > { %2319 = vrsqrt.f32 %v1567_v5 }
 0xd8b   : > { %v2318_v7 = vpop.eup %2317 }
 0xd8c   : > { %v1570_v10 = vmul.f32 %v2318_v7, %v1554_v57 }
 0xd8e   : > { %v1576_v14 = vmul.f32 %v1575_v8, %v1570_v10 }
 0xd8f   : > { %v2320_v13 = vpop.eup %2319 }
 0xd90   : > { %v1571_v15 = vmul.f32 %v2320_v13, %v1555_v17  ;;  %v1582_v18 = vadd.f32 %v1581_v12, %v1576_v14 }
 0xd92   : > { %v1577_v16 = vmul.f32 %v1575_v8, %v1571_v15 }
 0xd94   : > { %v1583_v19 = vadd.f32 %v1581_v12, %v1577_v16 }
 0xd96   : > { %v1584_v20 = vpack.c.bf16 %v1583_v19, %v1582_v18 }
 0xd98   : > { %2166 = vmatmul.mubr.msk.bf16.vlgmr.msra.gmra.mrb[36].mxu0 %vm500_vm1, %v1584_v20 }
 0xe6b   : > { %v1642_v26 = vpop.f32.mrb[36].mxu0 }
 0xe6c   : > { %v1643_v27 = vadd.f32 %v1642_v26, %v1592_v25  ;;  %v2167_v28 = vpop.f32.mrb[37].mxu0 }
 0xe6d   : > { %v1645_v29 = vpop.f32.mrb[38].mxu0 }
 0xe6e   : > { %v1646_v30 = vadd.f32 %v1645_v29, %v1592_v25  ;;  %v2168_v31 = vpop.f32.mrb[39].mxu0  ;;  %v1649_v32 = vmax.f32 %v1643_v27, 0.0 }
 0xe70   : > { %v1650_v33 = vmax.f32 %v1646_v30, 0.0 }
 0xe72   : > { %v1651_v34 = vpack.c.bf16 %v1650_v33, %v1649_v32 }
 0xe74   : > { %2178 = vmatmul.mubr.msk.bf16.vlgmr.msra.gmra.mrb[36].mxu1 %vm1688_vm7, %v1651_v34 }
 0xf47   : > { %v1726_v37 = vpop.f32.mrb[36].mxu1 }
 0xf48   : > { %v1727_v39 = vadd.f32 %v1726_v37, %v1663_v0  ;;  %v2179_v40 = vpop.f32.mrb[37].mxu1 }
 0xf49   : > { %v1729_v41 = vpop.f32.mrb[38].mxu1 }
 0xf4a   : > { %v1730_v42 = vadd.f32 %v1729_v41, %v1663_v0  ;;  %v2180_v43 = vpop.f32.mrb[39].mxu1  ;;  %v1733_v44 = vadd.f32 %v1727_v39, %v1582_v18 }
 0xf4c   : > { %v1735_v45 = vsel %vm500_vm1, %v1733_v44, 0.0  ;;  %v1734_v46 = vadd.f32 %v1730_v42, %v1583_v19 }
 0xf4d   : > { %1736 = vadd.xlane.f32.xlu1 %v1735_v45 }
 0xf4e   : > { %v1738_v47 = vsel %vm500_vm1, %v1734_v46, 0.0 }
 0xf4f   : > { %1739 = vadd.xlane.f32.xlu0 %v1738_v47 }
 0xfda   : > { %v1737_v49 = vpop.xlane.xlu1 %1736 }
 0xfdb   : > { %v1741_v50 = vmul.f32 0.03125, %v1737_v49 }
 0xfdc   : > { %v1740_v51 = vpop.xlane.xlu0 %1739 }
 0xfdd   : > { %v1743_v53 = vsub.f32 %v1733_v44, %v1741_v50  ;;  %v1742_v54 = vmul.f32 0.03125, %v1740_v51 }
 0xfdf   : > { %v1744_v55 = vsub.f32 %v1734_v46, %v1742_v54  ;;  %v1745_v56 = vmul.f32 %v1743_v53, %v1743_v53 }
 0xfe1   : > { %v1747_v57 = vsel %vm500_vm1, %v1745_v56, 0.0  ;;  %v1746_v58 = vmul.f32 %v1744_v55, %v1744_v55 }
 0xfe2   : > { %1748 = vadd.xlane.f32.xlu1 %v1747_v57 }
 0xfe3   : > { %v1750_v17 = vsel %vm500_vm1, %v1746_v58, 0.0 }
 0xfe4   : > { %1751 = vadd.xlane.f32.xlu0 %v1750_v17 }
0x106f   : > { %v1749_v22 = vpop.xlane.xlu1 %1748 }
0x1070   : > { %v1753_v59 = vmul.f32 0.03125, %v1749_v22 }
0x1071   : > { %v1752_v60 = vpop.xlane.xlu0 %1751 }
0x1072   : > { %v1755_v61 = vadd.f32 1e-05, %v1753_v59  ;;  %v1754_v62 = vmul.f32 0.03125, %v1752_v60 }
0x1074   : > { %2321 = vrsqrt.f32 %v1755_v61  ;;  %v1756_v63 = vadd.f32 1e-05, %v1754_v62 }
0x1076   : > { %2323 = vrsqrt.f32 %v1756_v63 }
0x107e   : > { %v2322_v1 = vpop.eup %2321 }
0x107f   : > { %v1759_v3 = vmul.f32 %v2322_v1, %v1743_v53 }
0x1080   : > { %v2324_v4 = vpop.eup %2323 }
0x1081   : > { %v1765_v5 = vmul.f32 %v1764_v52, %v1759_v3  ;;  %v1760_v6 = vmul.f32 %v2324_v4, %v1744_v55 }
0x1083   : > { %v1771_v7 = vadd.f32 %v1770_v2, %v1765_v5  ;;  %v1766_v8 = vmul.f32 %v1764_v52, %v1760_v6 }
0x1085   : > { %v1772_v36 = vadd.f32 %v1770_v2, %v1766_v8  ;;  %1773 = vst.msk [vmem:[%s438_s16] sm:$0xff] %vm500_vm1, %v1771_v7 }
0x1087   : > { %1774 = vst.msk [vmem:[%s438_s16 + $0x8] sm:$0xff] %vm500_vm1, %v1772_v36 }
0x1088   : > { %2422 = shalt.err (!%p2419_p11)
}
0x1089   : > { %s2423_s24 = scalar_lea.hbm %s2938_s11, 256  ;;  %s2427_s28 = scalar_lea.hbm %s2995_s9, 512 }
0x108a   : > { %p2424_p13 = scmp.ne.s32.totalorder %s2938_s11, %s2423_s24  ;;  %p2428_p6 = scmp.lt.u32.totalorder %s2938_s11, %s2995_s9 }
0x108b   : > { %p2429_p9 = scmp.lt.u32.totalorder %s2427_s28, %s2423_s24  ;;  %p2431_p12 = scmp.lt.u32.totalorder %s2423_s24, %s2938_s11 }
0x108c   : > { %p2425_p5 = pnand %p2424_p13, %p3019_p1 }
0x108d   : > { %p2430_p10 = por %p2429_p9, %p2428_p6 }
0x108e   : > { %p2426_p0 = pneg %p2425_p5 }
0x108f   : > { %p2432_p2 = por %p2431_p12, %p2430_p10 }
0x1091   : > { %p2433_p3 = pnand %p2432_p2, %p2426_p0 }
0x1093   : > { %2436 = shalt.err (!%p2433_p3)
}
0x1094   : > { %s2507_s14 = smov 128  }
0x1095   : > { %2193 = dma.vmem_to_hbm [thread:$0]  (%p3019_p1), %s2941_s22, 256, %s2938_s11, %s2944_s13, %s2507_s14, %s2507_s14, %s2503_s23  }
0x1096 PF: > { %s3020_s16 = sld [smem:[#allocation16_spill]]  ;;  %p2215_p4 = scmp.ge.s32.totalorder %s2479_s12, 2 }
0x1097   : > { %s1804_s25 = sand.u32 1, %s2467_s30  }
0x1098   : > { %s1805_s26 = scalar_lea.sflag [#allocation5], %s1804_s25 }
0x109c   : > { %p3021_p7 = scmp.ne.s32.totalorder %s3020_s16, 0 }
0x109e   : > { %p2206_p8 = pnand %p2215_p4, %p3021_p7 }
0x10a0   : > { %2462 = dma.done.wait (!%p2206_p8), %s1805_s26, 256  }
0x10a1   : > { %2464 = vsyncadd (!%p2206_p8), %s1805_s26, 4294967040  ;;  %s3022_s12 = sld [smem:[#allocation14_spill]]  ;;  %s3023_s29 = sld [smem:[#allocation13_spill]] }
0x10a2   : > { %s3024_s11 = sld [smem:[#allocation15_spill]]  ;;  %s3025_s30 = smov %s2471_s10 }
0x10a7   : > { %p21_p11 = scmp.ge.s32.totalorder %s3022_s12, 4   ;;  %s3026_s10 = smov %s3023_s29 }
0x10a9   :  { %23 = sbr.rel (!%p21_p11) target bundleno = 7 (0x7), region = 119 }
0x10b0   :  { %1810 = vsyncpa [#allocation4], 1 }
0x10b1   :  { %1812 = vsyncpa [#allocation4 + $0x1], 1 }
0x10b2   :  { %1813 = vsyncpa [#allocation7], 1 }
0x10b3   :  { %1814 = vsyncpa [#allocation5], 1 }
0x10b4   :  { %1816 = vsyncpa [#allocation5 + $0x1], 1 }

</bundles_post_ra>
